<compile_context>
chip_gen: v7x
topology: tpu7x:2x2x1
jax: 0.10.0
libtpu: 0.0.40
codegen_flags: <defaults>
</compile_context>

<pallas_src>
import functools

import jax
import jax.numpy as jnp
from jax import lax
from jax.experimental import pallas as pl
from jax.experimental.pallas import tpu as pltpu


# ----------------------------------------------------------------------------
# Fused EncoderLayer kernel: one CVRP instance (N, D) per grid step.
# ----------------------------------------------------------------------------
def _encoder_layer_kernel(x_ref, wq_ref, wk_ref, wv_ref, wc_ref,
                          w1_ref, b1_ref, w2_ref, vecs_ref, o_ref,
                          *, head_num, qkv_dim):
    H, Dk = head_num, qkv_dim

    x = x_ref[...]                              # (N, D) f32 tokens of one instance
    xb = x.astype(jnp.bfloat16)

    vecs = vecs_ref[...]                        # packed (1, D) parameters, f32
    bc, n1w, n1b = vecs[0:1], vecs[1:2], vecs[2:3]
    n2w, n2b, b2 = vecs[3:4], vecs[4:5], vecs[5:6]
    alpha1, alpha2 = vecs[6:7], vecs[7:8]       # DynamicTanh alphas (broadcast rows)

    # ---- Q/K/V projections: single lane-dense 2-D matmuls, bf16 in / f32 acc ----
    q = jnp.dot(xb, wq_ref[...], preferred_element_type=jnp.float32)  # (N, H*Dk)
    k = jnp.dot(xb, wk_ref[...], preferred_element_type=jnp.float32)
    v = jnp.dot(xb, wv_ref[...], preferred_element_type=jnp.float32)
    qb = q.astype(jnp.bfloat16)
    kb = k.astype(jnp.bfloat16)
    vb = v.astype(jnp.bfloat16)

    scale = qkv_dim ** -0.5
    mh = jnp.zeros_like(x)                      # (N, D) attention+combine accumulator

    # ---- per-head attention + un-folded combine (head-major Wc) ----
    # TODO(synk): replace this static head loop with a head-batched einsum (or a
    # head grid axis) at production widths so the MXU sees wider contractions.
    for h in range(H):
        qh = qb[:, h * Dk:(h + 1) * Dk]         # (N, Dk) static lane slice
        kh = kb[:, h * Dk:(h + 1) * Dk]
        vh = vb[:, h * Dk:(h + 1) * Dk]

        s = lax.dot_general(qh, kh, (((1,), (1,)), ((), ())),
                            preferred_element_type=jnp.float32) * scale   # (N, N)
        s = s - jnp.max(s, axis=-1, keepdims=True)
        e = jnp.exp(s)
        p = e * pl.reciprocal(jnp.sum(e, axis=-1, keepdims=True), approx=True)

        oh = jnp.dot(p.astype(jnp.bfloat16), vh,
                     preferred_element_type=jnp.float32)                  # (N, Dk)
        # un-folded combine: accumulate this head's slice of oc @ Wc
        mh = mh + jnp.dot(oh.astype(jnp.bfloat16), wc_ref[h],
                          preferred_element_type=jnp.float32)             # (N, D)
    mh = mh + bc

    # ---- Add & DynamicTanh norm #1 (channels_last=False ≡ per-channel) ----
    out1 = jnp.tanh(alpha1 * (x + mh)) * n1w + n1b

    # ---- feed forward (ReLU MLP) ----
    h1 = jnp.maximum(
        jnp.dot(out1.astype(jnp.bfloat16), w1_ref[...],
                preferred_element_type=jnp.float32) + b1_ref[...], 0.0)
    ff = jnp.dot(h1.astype(jnp.bfloat16), w2_ref[...],
                 preferred_element_type=jnp.float32) + b2

    # ---- Add & DynamicTanh norm #2 ----
    o_ref[...] = (jnp.tanh(alpha2 * (out1 + ff)) * n2w + n2b).astype(o_ref.dtype)


# ----------------------------------------------------------------------------
# Wrapper
# ----------------------------------------------------------------------------
def encoder_layer_forward(x, params, *, head_num, qkv_dim):
    """Fused Pallas EncoderLayer.  x: (B, N, D) float32 -> (B, N, D) float32."""
    B, N, D = x.shape
    H, Dk = head_num, qkv_dim
    HD = H * Dk
    F = params['W1'].shape[1]

    # bf16 weights (half the DMA bytes / VMEM); head-major combine weight.
    wq = params['Wq'].astype(jnp.bfloat16)                         # (D, HD)
    wk = params['Wk'].astype(jnp.bfloat16)
    wv = params['Wv'].astype(jnp.bfloat16)
    wc3 = params['Wc'].reshape(H, Dk, D).astype(jnp.bfloat16)      # (H, Dk, D)
    w1 = params['W1'].astype(jnp.bfloat16)                         # (D, F)
    w2 = params['W2'].astype(jnp.bfloat16)                         # (F, D)
    b1 = params['b1'].reshape(1, F).astype(jnp.float32)

    # All (1, D) parameters packed into one (8, D) VMEM block (one sublane tile).
    ones = jnp.ones((D,), jnp.float32)
    vecs = jnp.stack([
        params['bc'], params['n1w'], params['n1b'],
        params['n2w'], params['n2b'], params['b2'],
        params['alpha1'] * ones, params['alpha2'] * ones,
    ], axis=0).astype(jnp.float32)                                  # (8, D)

    kernel = functools.partial(_encoder_layer_kernel, head_num=H, qkv_dim=Dk)
    out = pl.pallas_call(
        kernel,
        out_shape=jax.ShapeDtypeStruct((B, N, D), jnp.float32),
        grid=(B,),                                   # one instance per grid step
        in_specs=[
            pl.BlockSpec((None, N, D), lambda b: (b, 0, 0)),   # tokens (batch squeezed)
            pl.BlockSpec((D, HD), lambda b: (0, 0)),           # Wq
            pl.BlockSpec((D, HD), lambda b: (0, 0)),           # Wk
            pl.BlockSpec((D, HD), lambda b: (0, 0)),           # Wv
            pl.BlockSpec((H, Dk, D), lambda b: (0, 0, 0)),     # Wc (head-major)
            pl.BlockSpec((D, F), lambda b: (0, 0)),            # W1
            pl.BlockSpec((1, F), lambda b: (0, 0)),            # b1
            pl.BlockSpec((F, D), lambda b: (0, 0)),            # W2
            pl.BlockSpec((8, D), lambda b: (0, 0)),            # packed (1, D) params
        ],
        out_specs=pl.BlockSpec((None, N, D), lambda b: (b, 0, 0)),
        compiler_params=pltpu.CompilerParams(
            dimension_semantics=("parallel",),
            vmem_limit_bytes=64 * 1024 * 1024),
    )(x.astype(jnp.float32), wq, wk, wv, wc3, w1, b1, w2, vecs)

    return out


# ----------------------------------------------------------------------------
# Pure-JAX reference (mirrors the PyTorch EncoderLayer exactly, f32/HIGHEST)
# ----------------------------------------------------------------------------
def encoder_layer_reference(x, p, *, head_num):
    B, N, D = x.shape
    HD = p['Wq'].shape[1]
    Dk = HD // head_num
    hi = lax.Precision.HIGHEST

    def by_heads(t):                                  # (B, N, HD) -> (B, H, N, Dk)
        return t.reshape(B, N, head_num, Dk).transpose(0, 2, 1, 3)

    q = by_heads(jnp.einsum('bnd,de->bne', x, p['Wq'], precision=hi))
    k = by_heads(jnp.einsum('bnd,de->bne', x, p['Wk'], precision=hi))
    v = by_heads(jnp.einsum('bnd,de->bne', x, p['Wv'], precision=hi))
    s = jnp.einsum('bhnd,bhmd->bhnm', q, k, precision=hi) / jnp.sqrt(jnp.float32(Dk))
    w = jax.nn.softmax(s, axis=-1)
    oc = jnp.einsum('bhnm,bhmd->bhnd', w, v, precision=hi)
    oc = oc.transpose(0, 2, 1, 3).reshape(B, N, HD)
    mh = jnp.einsum('bnd,de->bne', oc, p['Wc'], precision=hi) + p['bc']
    out1 = jnp.tanh(p['alpha1'] * (x + mh)) * p['n1w'] + p['n1b']
    h1 = jnp.maximum(jnp.einsum('bnd,df->bnf', out1, p['W1'], precision=hi) + p['b1'], 0.0)
    ff = jnp.einsum('bnf,fd->bnd', h1, p['W2'], precision=hi) + p['b2']
    return jnp.tanh(p['alpha2'] * (out1 + ff)) * p['n2w'] + p['n2b']


# ----------------------------------------------------------------------------
# Deterministic synthetic parameters (PyTorch layout: y = x @ W + b)
# ----------------------------------------------------------------------------
def init_encoder_layer_params(key, embedding_dim, ff_hidden_dim, head_num, qkv_dim):
    D, F = embedding_dim, ff_hidden_dim
    HD = head_num * qkv_dim
    ks = jax.random.split(key, 13)
    s = 0.1

    def nrm(k, shape):
        return s * jax.random.normal(k, shape, jnp.float32)

    return dict(
        Wq=nrm(ks[0], (D, HD)),
        Wk=nrm(ks[1], (D, HD)),
        Wv=nrm(ks[2], (D, HD)),
        Wc=nrm(ks[3], (HD, D)),
        bc=nrm(ks[4], (D,)),
        W1=nrm(ks[5], (D, F)),
        b1=nrm(ks[6], (F,)),
        W2=nrm(ks[7], (F, D)),
        b2=nrm(ks[8], (D,)),
        n1w=1.0 + nrm(ks[9], (D,)),
        n1b=nrm(ks[10], (D,)),
        n2w=1.0 + nrm(ks[11], (D,)),
        n2b=nrm(ks[12], (D,)),
        alpha1=jnp.float32(0.6),
        alpha2=jnp.float32(0.4),
    )


# ----------------------------------------------------------------------------
# Main
# ----------------------------------------------------------------------------
if __name__ == "__main__":
    embedding_dim, ff_hidden_dim, head_num, qkv_dim = 32, 64, 4, 8
    B, N = 2, 9            # two CVRP instances, 9 nodes each

    key = jax.random.PRNGKey(0)
    k_params, k_x = jax.random.split(key)
    params = init_encoder_layer_params(k_params, embedding_dim, ff_hidden_dim,
                                       head_num, qkv_dim)
    x = jax.random.normal(k_x, (B, N, embedding_dim), jnp.float32)

    fwd = jax.jit(functools.partial(encoder_layer_forward,
                                    head_num=head_num, qkv_dim=qkv_dim))
    out = jax.block_until_ready(fwd(x, params))

    ref = encoder_layer_reference(x, params, head_num=head_num)
    err = float(jnp.max(jnp.abs(out - ref)))
    # Tolerance sized for bf16 matmul operands + approx softmax reciprocal vs the
    # f32 HIGHEST-precision reference.
    if out.shape != (B, N, embedding_dim) or not (err < 3e-2):
        raise AssertionError(f"Pallas EncoderLayer mismatch: max abs err = {err}")
    print("KERNEL_OK")
</pallas_src>

<mosaic_0001>
module attributes {stable_mosaic.version = 11 : i64} {
  func.func @_encoder_layer_kernel(%arg0: i32, %arg1: memref<1x9x32xf32, #tpu.memory_space<vmem>>, %arg2: memref<32x32xbf16, #tpu.memory_space<vmem>>, %arg3: memref<32x32xbf16, #tpu.memory_space<vmem>>, %arg4: memref<32x32xbf16, #tpu.memory_space<vmem>>, %arg5: memref<4x8x32xbf16, #tpu.memory_space<vmem>>, %arg6: memref<32x64xbf16, #tpu.memory_space<vmem>>, %arg7: memref<1x64xf32, #tpu.memory_space<vmem>>, %arg8: memref<64x32xbf16, #tpu.memory_space<vmem>>, %arg9: memref<8x32xf32, #tpu.memory_space<vmem>>, %arg10: memref<1x9x32xf32, #tpu.memory_space<vmem>>) attributes {dimension_semantics = [#tpu.dimension_semantics<parallel>], iteration_bounds = array<i64: 2>, scalar_prefetch = 0 : i64, scratch_operands = 0 : i64, tpu.core_type = #tpu.core_type<tc>, window_params = [{transform_indices = @transform_0, window_bounds = array<i64: 1, 9, 32>}, {pipeline_mode = #tpu.pipeline_mode<synchronous>, transform_indices = @transform_1, window_bounds = array<i64: 32, 32>}, {pipeline_mode = #tpu.pipeline_mode<synchronous>, transform_indices = @transform_2, window_bounds = array<i64: 32, 32>}, {pipeline_mode = #tpu.pipeline_mode<synchronous>, transform_indices = @transform_3, window_bounds = array<i64: 32, 32>}, {pipeline_mode = #tpu.pipeline_mode<synchronous>, transform_indices = @transform_4, window_bounds = array<i64: 4, 8, 32>}, {pipeline_mode = #tpu.pipeline_mode<synchronous>, transform_indices = @transform_5, window_bounds = array<i64: 32, 64>}, {pipeline_mode = #tpu.pipeline_mode<synchronous>, transform_indices = @transform_6, window_bounds = array<i64: 1, 64>}, {pipeline_mode = #tpu.pipeline_mode<synchronous>, transform_indices = @transform_7, window_bounds = array<i64: 64, 32>}, {pipeline_mode = #tpu.pipeline_mode<synchronous>, transform_indices = @transform_8, window_bounds = array<i64: 8, 32>}, {transform_indices = @transform_9, window_bounds = array<i64: 1, 9, 32>}]} {
    %c0 = arith.constant 0 : index
    %c0_0 = arith.constant 0 : index
    %c0_1 = arith.constant 0 : index
    %0 = vector.load %arg1[%c0, %c0_0, %c0_1] : memref<1x9x32xf32, #tpu.memory_space<vmem>>, vector<1x9x32xf32>
    %1 = vector.shape_cast %0 : vector<1x9x32xf32> to vector<9x32xf32>
    %2 = arith.truncf %1 : vector<9x32xf32> to vector<9x32xbf16>
    %c0_2 = arith.constant 0 : index
    %c0_3 = arith.constant 0 : index
    %3 = vector.load %arg9[%c0_2, %c0_3] : memref<8x32xf32, #tpu.memory_space<vmem>>, vector<8x32xf32>
    %4 = vector.extract_strided_slice %3 {offsets = [0, 0], sizes = [1, 32], strides = [1, 1]} : vector<8x32xf32> to vector<1x32xf32>
    %5 = vector.extract_strided_slice %3 {offsets = [1, 0], sizes = [1, 32], strides = [1, 1]} : vector<8x32xf32> to vector<1x32xf32>
    %6 = vector.extract_strided_slice %3 {offsets = [2, 0], sizes = [1, 32], strides = [1, 1]} : vector<8x32xf32> to vector<1x32xf32>
    %7 = vector.extract_strided_slice %3 {offsets = [3, 0], sizes = [1, 32], strides = [1, 1]} : vector<8x32xf32> to vector<1x32xf32>
    %8 = vector.extract_strided_slice %3 {offsets = [4, 0], sizes = [1, 32], strides = [1, 1]} : vector<8x32xf32> to vector<1x32xf32>
    %9 = vector.extract_strided_slice %3 {offsets = [5, 0], sizes = [1, 32], strides = [1, 1]} : vector<8x32xf32> to vector<1x32xf32>
    %10 = vector.extract_strided_slice %3 {offsets = [6, 0], sizes = [1, 32], strides = [1, 1]} : vector<8x32xf32> to vector<1x32xf32>
    %11 = vector.extract_strided_slice %3 {offsets = [7, 0], sizes = [1, 32], strides = [1, 1]} : vector<8x32xf32> to vector<1x32xf32>
    %c0_4 = arith.constant 0 : index
    %c0_5 = arith.constant 0 : index
    %12 = vector.load %arg2[%c0_4, %c0_5] : memref<32x32xbf16, #tpu.memory_space<vmem>>, vector<32x32xbf16>
    %cst = arith.constant dense<0.000000e+00> : vector<9x32xf32>
    %13 = tpu.matmul %2, %12, %cst {dimension_numbers = #tpu.dot_dimension_numbers<[1], [0], [0], [1], [0, 0, 1, 1], [], []>} : vector<9x32xbf16>, vector<32x32xbf16>, vector<9x32xf32> -> vector<9x32xf32>
    %c0_6 = arith.constant 0 : index
    %c0_7 = arith.constant 0 : index
    %14 = vector.load %arg3[%c0_6, %c0_7] : memref<32x32xbf16, #tpu.memory_space<vmem>>, vector<32x32xbf16>
    %cst_8 = arith.constant dense<0.000000e+00> : vector<9x32xf32>
    %15 = tpu.matmul %2, %14, %cst_8 {dimension_numbers = #tpu.dot_dimension_numbers<[1], [0], [0], [1], [0, 0, 1, 1], [], []>} : vector<9x32xbf16>, vector<32x32xbf16>, vector<9x32xf32> -> vector<9x32xf32>
    %c0_9 = arith.constant 0 : index
    %c0_10 = arith.constant 0 : index
    %16 = vector.load %arg4[%c0_9, %c0_10] : memref<32x32xbf16, #tpu.memory_space<vmem>>, vector<32x32xbf16>
    %cst_11 = arith.constant dense<0.000000e+00> : vector<9x32xf32>
    %17 = tpu.matmul %2, %16, %cst_11 {dimension_numbers = #tpu.dot_dimension_numbers<[1], [0], [0], [1], [0, 0, 1, 1], [], []>} : vector<9x32xbf16>, vector<32x32xbf16>, vector<9x32xf32> -> vector<9x32xf32>
    %18 = arith.truncf %13 : vector<9x32xf32> to vector<9x32xbf16>
    %19 = arith.truncf %15 : vector<9x32xf32> to vector<9x32xbf16>
    %20 = arith.truncf %17 : vector<9x32xf32> to vector<9x32xbf16>
    %cst_12 = arith.constant 0.000000e+00 : f32
    %21 = vector.broadcast %cst_12 : f32 to vector<9x32xf32>
    %22 = vector.extract_strided_slice %18 {offsets = [0, 0], sizes = [9, 8], strides = [1, 1]} : vector<9x32xbf16> to vector<9x8xbf16>
    %23 = vector.extract_strided_slice %19 {offsets = [0, 0], sizes = [9, 8], strides = [1, 1]} : vector<9x32xbf16> to vector<9x8xbf16>
    %24 = vector.extract_strided_slice %20 {offsets = [0, 0], sizes = [9, 8], strides = [1, 1]} : vector<9x32xbf16> to vector<9x8xbf16>
    %cst_13 = arith.constant dense<0.000000e+00> : vector<9x9xf32>
    %25 = tpu.matmul %22, %23, %cst_13 {dimension_numbers = #tpu.dot_dimension_numbers<[1], [1], [0], [0], [0, 0, 1, 0], [], []>} : vector<9x8xbf16>, vector<9x8xbf16>, vector<9x9xf32> -> vector<9x9xf32>
    %cst_14 = arith.constant 0.353553385 : f32
    %26 = vector.broadcast %cst_14 : f32 to vector<9x9xf32>
    %27 = arith.mulf %25, %26 : vector<9x9xf32>
    %cst_15 = arith.constant dense<0xFF800000> : vector<9xf32>
    %28 = vector.multi_reduction <maximumf>, %27, %cst_15 [1] : vector<9x9xf32> to vector<9xf32>
    %29 = vector.shape_cast %28 : vector<9xf32> to vector<9x1xf32>
    %30 = vector.broadcast %29 : vector<9x1xf32> to vector<9x9xf32>
    %31 = arith.subf %27, %30 : vector<9x9xf32>
    %32 = math.exp %31 : vector<9x9xf32>
    %cst_16 = arith.constant dense<0.000000e+00> : vector<9xf32>
    %33 = vector.multi_reduction <add>, %32, %cst_16 [1] : vector<9x9xf32> to vector<9xf32>
    %34 = vector.shape_cast %33 : vector<9xf32> to vector<9x1xf32>
    %35 = tpu.reciprocal %34 {approx = true} : vector<9x1xf32> -> vector<9x1xf32>
    %36 = vector.broadcast %35 : vector<9x1xf32> to vector<9x9xf32>
    %37 = arith.mulf %32, %36 : vector<9x9xf32>
    %38 = arith.truncf %37 : vector<9x9xf32> to vector<9x9xbf16>
    %cst_17 = arith.constant dense<0.000000e+00> : vector<9x8xf32>
    %39 = tpu.matmul %38, %24, %cst_17 {dimension_numbers = #tpu.dot_dimension_numbers<[1], [0], [0], [1], [0, 0, 1, 1], [], []>} : vector<9x9xbf16>, vector<9x8xbf16>, vector<9x8xf32> -> vector<9x8xf32>
    %40 = arith.truncf %39 : vector<9x8xf32> to vector<9x8xbf16>
    %c0_18 = arith.constant 0 : index
    %c0_19 = arith.constant 0 : index
    %c0_20 = arith.constant 0 : index
    %41 = vector.load %arg5[%c0_18, %c0_19, %c0_20] : memref<4x8x32xbf16, #tpu.memory_space<vmem>>, vector<1x8x32xbf16>
    %42 = vector.shape_cast %41 : vector<1x8x32xbf16> to vector<8x32xbf16>
    %cst_21 = arith.constant dense<0.000000e+00> : vector<9x32xf32>
    %43 = tpu.matmul %40, %42, %cst_21 {dimension_numbers = #tpu.dot_dimension_numbers<[1], [0], [0], [1], [0, 0, 1, 1], [], []>} : vector<9x8xbf16>, vector<8x32xbf16>, vector<9x32xf32> -> vector<9x32xf32>
    %44 = arith.addf %21, %43 : vector<9x32xf32>
    %45 = vector.extract_strided_slice %18 {offsets = [0, 8], sizes = [9, 8], strides = [1, 1]} : vector<9x32xbf16> to vector<9x8xbf16>
    %46 = vector.extract_strided_slice %19 {offsets = [0, 8], sizes = [9, 8], strides = [1, 1]} : vector<9x32xbf16> to vector<9x8xbf16>
    %47 = vector.extract_strided_slice %20 {offsets = [0, 8], sizes = [9, 8], strides = [1, 1]} : vector<9x32xbf16> to vector<9x8xbf16>
    %cst_22 = arith.constant dense<0.000000e+00> : vector<9x9xf32>
    %48 = tpu.matmul %45, %46, %cst_22 {dimension_numbers = #tpu.dot_dimension_numbers<[1], [1], [0], [0], [0, 0, 1, 0], [], []>} : vector<9x8xbf16>, vector<9x8xbf16>, vector<9x9xf32> -> vector<9x9xf32>
    %cst_23 = arith.constant 0.353553385 : f32
    %49 = vector.broadcast %cst_23 : f32 to vector<9x9xf32>
    %50 = arith.mulf %48, %49 : vector<9x9xf32>
    %cst_24 = arith.constant dense<0xFF800000> : vector<9xf32>
    %51 = vector.multi_reduction <maximumf>, %50, %cst_24 [1] : vector<9x9xf32> to vector<9xf32>
    %52 = vector.shape_cast %51 : vector<9xf32> to vector<9x1xf32>
    %53 = vector.broadcast %52 : vector<9x1xf32> to vector<9x9xf32>
    %54 = arith.subf %50, %53 : vector<9x9xf32>
    %55 = math.exp %54 : vector<9x9xf32>
    %cst_25 = arith.constant dense<0.000000e+00> : vector<9xf32>
    %56 = vector.multi_reduction <add>, %55, %cst_25 [1] : vector<9x9xf32> to vector<9xf32>
    %57 = vector.shape_cast %56 : vector<9xf32> to vector<9x1xf32>
    %58 = tpu.reciprocal %57 {approx = true} : vector<9x1xf32> -> vector<9x1xf32>
    %59 = vector.broadcast %58 : vector<9x1xf32> to vector<9x9xf32>
    %60 = arith.mulf %55, %59 : vector<9x9xf32>
    %61 = arith.truncf %60 : vector<9x9xf32> to vector<9x9xbf16>
    %cst_26 = arith.constant dense<0.000000e+00> : vector<9x8xf32>
    %62 = tpu.matmul %61, %47, %cst_26 {dimension_numbers = #tpu.dot_dimension_numbers<[1], [0], [0], [1], [0, 0, 1, 1], [], []>} : vector<9x9xbf16>, vector<9x8xbf16>, vector<9x8xf32> -> vector<9x8xf32>
    %63 = arith.truncf %62 : vector<9x8xf32> to vector<9x8xbf16>
    %c1 = arith.constant 1 : index
    %c0_27 = arith.constant 0 : index
    %c0_28 = arith.constant 0 : index
    %64 = vector.load %arg5[%c1, %c0_27, %c0_28] : memref<4x8x32xbf16, #tpu.memory_space<vmem>>, vector<1x8x32xbf16>
    %65 = vector.shape_cast %64 : vector<1x8x32xbf16> to vector<8x32xbf16>
    %cst_29 = arith.constant dense<0.000000e+00> : vector<9x32xf32>
    %66 = tpu.matmul %63, %65, %cst_29 {dimension_numbers = #tpu.dot_dimension_numbers<[1], [0], [0], [1], [0, 0, 1, 1], [], []>} : vector<9x8xbf16>, vector<8x32xbf16>, vector<9x32xf32> -> vector<9x32xf32>
    %67 = arith.addf %44, %66 : vector<9x32xf32>
    %68 = vector.extract_strided_slice %18 {offsets = [0, 16], sizes = [9, 8], strides = [1, 1]} : vector<9x32xbf16> to vector<9x8xbf16>
    %69 = vector.extract_strided_slice %19 {offsets = [0, 16], sizes = [9, 8], strides = [1, 1]} : vector<9x32xbf16> to vector<9x8xbf16>
    %70 = vector.extract_strided_slice %20 {offsets = [0, 16], sizes = [9, 8], strides = [1, 1]} : vector<9x32xbf16> to vector<9x8xbf16>
    %cst_30 = arith.constant dense<0.000000e+00> : vector<9x9xf32>
    %71 = tpu.matmul %68, %69, %cst_30 {dimension_numbers = #tpu.dot_dimension_numbers<[1], [1], [0], [0], [0, 0, 1, 0], [], []>} : vector<9x8xbf16>, vector<9x8xbf16>, vector<9x9xf32> -> vector<9x9xf32>
    %cst_31 = arith.constant 0.353553385 : f32
    %72 = vector.broadcast %cst_31 : f32 to vector<9x9xf32>
    %73 = arith.mulf %71, %72 : vector<9x9xf32>
    %cst_32 = arith.constant dense<0xFF800000> : vector<9xf32>
    %74 = vector.multi_reduction <maximumf>, %73, %cst_32 [1] : vector<9x9xf32> to vector<9xf32>
    %75 = vector.shape_cast %74 : vector<9xf32> to vector<9x1xf32>
    %76 = vector.broadcast %75 : vector<9x1xf32> to vector<9x9xf32>
    %77 = arith.subf %73, %76 : vector<9x9xf32>
    %78 = math.exp %77 : vector<9x9xf32>
    %cst_33 = arith.constant dense<0.000000e+00> : vector<9xf32>
    %79 = vector.multi_reduction <add>, %78, %cst_33 [1] : vector<9x9xf32> to vector<9xf32>
    %80 = vector.shape_cast %79 : vector<9xf32> to vector<9x1xf32>
    %81 = tpu.reciprocal %80 {approx = true} : vector<9x1xf32> -> vector<9x1xf32>
    %82 = vector.broadcast %81 : vector<9x1xf32> to vector<9x9xf32>
    %83 = arith.mulf %78, %82 : vector<9x9xf32>
    %84 = arith.truncf %83 : vector<9x9xf32> to vector<9x9xbf16>
    %cst_34 = arith.constant dense<0.000000e+00> : vector<9x8xf32>
    %85 = tpu.matmul %84, %70, %cst_34 {dimension_numbers = #tpu.dot_dimension_numbers<[1], [0], [0], [1], [0, 0, 1, 1], [], []>} : vector<9x9xbf16>, vector<9x8xbf16>, vector<9x8xf32> -> vector<9x8xf32>
    %86 = arith.truncf %85 : vector<9x8xf32> to vector<9x8xbf16>
    %c2 = arith.constant 2 : index
    %c0_35 = arith.constant 0 : index
    %c0_36 = arith.constant 0 : index
    %87 = vector.load %arg5[%c2, %c0_35, %c0_36] : memref<4x8x32xbf16, #tpu.memory_space<vmem>>, vector<1x8x32xbf16>
    %88 = vector.shape_cast %87 : vector<1x8x32xbf16> to vector<8x32xbf16>
    %cst_37 = arith.constant dense<0.000000e+00> : vector<9x32xf32>
    %89 = tpu.matmul %86, %88, %cst_37 {dimension_numbers = #tpu.dot_dimension_numbers<[1], [0], [0], [1], [0, 0, 1, 1], [], []>} : vector<9x8xbf16>, vector<8x32xbf16>, vector<9x32xf32> -> vector<9x32xf32>
    %90 = arith.addf %67, %89 : vector<9x32xf32>
    %91 = vector.extract_strided_slice %18 {offsets = [0, 24], sizes = [9, 8], strides = [1, 1]} : vector<9x32xbf16> to vector<9x8xbf16>
    %92 = vector.extract_strided_slice %19 {offsets = [0, 24], sizes = [9, 8], strides = [1, 1]} : vector<9x32xbf16> to vector<9x8xbf16>
    %93 = vector.extract_strided_slice %20 {offsets = [0, 24], sizes = [9, 8], strides = [1, 1]} : vector<9x32xbf16> to vector<9x8xbf16>
    %cst_38 = arith.constant dense<0.000000e+00> : vector<9x9xf32>
    %94 = tpu.matmul %91, %92, %cst_38 {dimension_numbers = #tpu.dot_dimension_numbers<[1], [1], [0], [0], [0, 0, 1, 0], [], []>} : vector<9x8xbf16>, vector<9x8xbf16>, vector<9x9xf32> -> vector<9x9xf32>
    %cst_39 = arith.constant 0.353553385 : f32
    %95 = vector.broadcast %cst_39 : f32 to vector<9x9xf32>
    %96 = arith.mulf %94, %95 : vector<9x9xf32>
    %cst_40 = arith.constant dense<0xFF800000> : vector<9xf32>
    %97 = vector.multi_reduction <maximumf>, %96, %cst_40 [1] : vector<9x9xf32> to vector<9xf32>
    %98 = vector.shape_cast %97 : vector<9xf32> to vector<9x1xf32>
    %99 = vector.broadcast %98 : vector<9x1xf32> to vector<9x9xf32>
    %100 = arith.subf %96, %99 : vector<9x9xf32>
    %101 = math.exp %100 : vector<9x9xf32>
    %cst_41 = arith.constant dense<0.000000e+00> : vector<9xf32>
    %102 = vector.multi_reduction <add>, %101, %cst_41 [1] : vector<9x9xf32> to vector<9xf32>
    %103 = vector.shape_cast %102 : vector<9xf32> to vector<9x1xf32>
    %104 = tpu.reciprocal %103 {approx = true} : vector<9x1xf32> -> vector<9x1xf32>
    %105 = vector.broadcast %104 : vector<9x1xf32> to vector<9x9xf32>
    %106 = arith.mulf %101, %105 : vector<9x9xf32>
    %107 = arith.truncf %106 : vector<9x9xf32> to vector<9x9xbf16>
    %cst_42 = arith.constant dense<0.000000e+00> : vector<9x8xf32>
    %108 = tpu.matmul %107, %93, %cst_42 {dimension_numbers = #tpu.dot_dimension_numbers<[1], [0], [0], [1], [0, 0, 1, 1], [], []>} : vector<9x9xbf16>, vector<9x8xbf16>, vector<9x8xf32> -> vector<9x8xf32>
    %109 = arith.truncf %108 : vector<9x8xf32> to vector<9x8xbf16>
    %c3 = arith.constant 3 : index
    %c0_43 = arith.constant 0 : index
    %c0_44 = arith.constant 0 : index
    %110 = vector.load %arg5[%c3, %c0_43, %c0_44] : memref<4x8x32xbf16, #tpu.memory_space<vmem>>, vector<1x8x32xbf16>
    %111 = vector.shape_cast %110 : vector<1x8x32xbf16> to vector<8x32xbf16>
    %cst_45 = arith.constant dense<0.000000e+00> : vector<9x32xf32>
    %112 = tpu.matmul %109, %111, %cst_45 {dimension_numbers = #tpu.dot_dimension_numbers<[1], [0], [0], [1], [0, 0, 1, 1], [], []>} : vector<9x8xbf16>, vector<8x32xbf16>, vector<9x32xf32> -> vector<9x32xf32>
    %113 = arith.addf %90, %112 : vector<9x32xf32>
    %114 = vector.broadcast %4 : vector<1x32xf32> to vector<9x32xf32>
    %115 = arith.addf %113, %114 : vector<9x32xf32>
    %116 = arith.addf %1, %115 : vector<9x32xf32>
    %117 = vector.broadcast %10 : vector<1x32xf32> to vector<9x32xf32>
    %118 = arith.mulf %117, %116 : vector<9x32xf32>
    %119 = math.tanh %118 : vector<9x32xf32>
    %120 = vector.broadcast %5 : vector<1x32xf32> to vector<9x32xf32>
    %121 = arith.mulf %119, %120 : vector<9x32xf32>
    %122 = vector.broadcast %6 : vector<1x32xf32> to vector<9x32xf32>
    %123 = arith.addf %121, %122 : vector<9x32xf32>
    %124 = arith.truncf %123 : vector<9x32xf32> to vector<9x32xbf16>
    %c0_46 = arith.constant 0 : index
    %c0_47 = arith.constant 0 : index
    %125 = vector.load %arg6[%c0_46, %c0_47] : memref<32x64xbf16, #tpu.memory_space<vmem>>, vector<32x64xbf16>
    %cst_48 = arith.constant dense<0.000000e+00> : vector<9x64xf32>
    %126 = tpu.matmul %124, %125, %cst_48 {dimension_numbers = #tpu.dot_dimension_numbers<[1], [0], [0], [1], [0, 0, 1, 1], [], []>} : vector<9x32xbf16>, vector<32x64xbf16>, vector<9x64xf32> -> vector<9x64xf32>
    %c0_49 = arith.constant 0 : index
    %c0_50 = arith.constant 0 : index
    %127 = vector.load %arg7[%c0_49, %c0_50] : memref<1x64xf32, #tpu.memory_space<vmem>>, vector<1x64xf32>
    %128 = vector.broadcast %127 : vector<1x64xf32> to vector<9x64xf32>
    %129 = arith.addf %126, %128 : vector<9x64xf32>
    %cst_51 = arith.constant 0.000000e+00 : f32
    %130 = vector.broadcast %cst_51 : f32 to vector<9x64xf32>
    %131 = arith.maximumf %129, %130 : vector<9x64xf32>
    %132 = arith.truncf %131 : vector<9x64xf32> to vector<9x64xbf16>
    %c0_52 = arith.constant 0 : index
    %c0_53 = arith.constant 0 : index
    %133 = vector.load %arg8[%c0_52, %c0_53] : memref<64x32xbf16, #tpu.memory_space<vmem>>, vector<64x32xbf16>
    %cst_54 = arith.constant dense<0.000000e+00> : vector<9x32xf32>
    %134 = tpu.matmul %132, %133, %cst_54 {dimension_numbers = #tpu.dot_dimension_numbers<[1], [0], [0], [1], [0, 0, 1, 1], [], []>} : vector<9x64xbf16>, vector<64x32xbf16>, vector<9x32xf32> -> vector<9x32xf32>
    %135 = vector.broadcast %9 : vector<1x32xf32> to vector<9x32xf32>
    %136 = arith.addf %134, %135 : vector<9x32xf32>
    %137 = arith.addf %123, %136 : vector<9x32xf32>
    %138 = vector.broadcast %11 : vector<1x32xf32> to vector<9x32xf32>
    %139 = arith.mulf %138, %137 : vector<9x32xf32>
    %140 = math.tanh %139 : vector<9x32xf32>
    %141 = vector.broadcast %7 : vector<1x32xf32> to vector<9x32xf32>
    %142 = arith.mulf %140, %141 : vector<9x32xf32>
    %143 = vector.broadcast %8 : vector<1x32xf32> to vector<9x32xf32>
    %144 = arith.addf %142, %143 : vector<9x32xf32>
    %c0_55 = arith.constant 0 : index
    %c0_56 = arith.constant 0 : index
    %c0_57 = arith.constant 0 : index
    %145 = vector.load %arg10[%c0_55, %c0_56, %c0_57] : memref<1x9x32xf32, #tpu.memory_space<vmem>>, vector<1x9x32xf32>
    %146 = vector.shape_cast %145 : vector<1x9x32xf32> to vector<9x32xf32>
    %147 = vector.shape_cast %144 : vector<9x32xf32> to vector<1x9x32xf32>
    tpu.vector_store %arg10[%c0_55, %c0_56, %c0_57], %147 {strides = array<i32>} : memref<1x9x32xf32, #tpu.memory_space<vmem>>, vector<1x9x32xf32>,
    return
  }
  func.func @transform_0(%arg0: i32) -> (i32, i32, i32) {
    %c0_i32 = arith.constant 0 : i32
    %c0_i32_0 = arith.constant 0 : i32
    %c0_i32_1 = arith.constant 0 : i32
    return %arg0, %c0_i32, %c0_i32_0 : i32, i32, i32
  }
  func.func @transform_1(%arg0: i32) -> (i32, i32) {
    %c0_i32 = arith.constant 0 : i32
    %c0_i32_0 = arith.constant 0 : i32
    %c0_i32_1 = arith.constant 0 : i32
    return %c0_i32, %c0_i32_0 : i32, i32
  }
  func.func @transform_2(%arg0: i32) -> (i32, i32) {
    %c0_i32 = arith.constant 0 : i32
    %c0_i32_0 = arith.constant 0 : i32
    %c0_i32_1 = arith.constant 0 : i32
    return %c0_i32, %c0_i32_0 : i32, i32
  }
  func.func @transform_3(%arg0: i32) -> (i32, i32) {
    %c0_i32 = arith.constant 0 : i32
    %c0_i32_0 = arith.constant 0 : i32
    %c0_i32_1 = arith.constant 0 : i32
    return %c0_i32, %c0_i32_0 : i32, i32
  }
  func.func @transform_4(%arg0: i32) -> (i32, i32, i32) {
    %c0_i32 = arith.constant 0 : i32
    %c0_i32_0 = arith.constant 0 : i32
    %c0_i32_1 = arith.constant 0 : i32
    %c0_i32_2 = arith.constant 0 : i32
    return %c0_i32, %c0_i32_0, %c0_i32_1 : i32, i32, i32
  }
  func.func @transform_5(%arg0: i32) -> (i32, i32) {
    %c0_i32 = arith.constant 0 : i32
    %c0_i32_0 = arith.constant 0 : i32
    %c0_i32_1 = arith.constant 0 : i32
    return %c0_i32, %c0_i32_0 : i32, i32
  }
  func.func @transform_6(%arg0: i32) -> (i32, i32) {
    %c0_i32 = arith.constant 0 : i32
    %c0_i32_0 = arith.constant 0 : i32
    %c0_i32_1 = arith.constant 0 : i32
    return %c0_i32, %c0_i32_0 : i32, i32
  }
  func.func @transform_7(%arg0: i32) -> (i32, i32) {
    %c0_i32 = arith.constant 0 : i32
    %c0_i32_0 = arith.constant 0 : i32
    %c0_i32_1 = arith.constant 0 : i32
    return %c0_i32, %c0_i32_0 : i32, i32
  }
  func.func @transform_8(%arg0: i32) -> (i32, i32) {
    %c0_i32 = arith.constant 0 : i32
    %c0_i32_0 = arith.constant 0 : i32
    %c0_i32_1 = arith.constant 0 : i32
    return %c0_i32, %c0_i32_0 : i32, i32
  }
  func.func @transform_9(%arg0: i32) -> (i32, i32, i32) {
    %c0_i32 = arith.constant 0 : i32
    %c0_i32_0 = arith.constant 0 : i32
    %c0_i32_1 = arith.constant 0 : i32
    return %arg0, %c0_i32, %c0_i32_0 : i32, i32, i32
  }
}

</mosaic_0001>

<bundles_post_ra>
// kernel: encoder_layer_forward.1
= control target key start
LH: loop header
LB: loop body
LE: loop exit
PB: predicated region body
PF: predicated region fallthrough
CT: control target
= control target key end

     0   :  { %s3095_s0 = inlined_call_operand.hbm [shape: f32[2,9,32], index: 0, kind: input, shape index: {}]   ;;  %s3096_s1 = inlined_call_operand.hbm [shape: bf16[32,32], index: 1, kind: input, shape index: {}]   ;;  %s3097_s2 = inlined_call_operand.hbm [shape: bf16[32,32], index: 2, kind: input, shape index: {}]   ;;  %s3098_s3 = inlined_call_operand.hbm [shape: bf16[32,32], index: 3, kind: input, shape index: {}]   ;;  %s3099_s4 = inlined_call_operand.hbm [shape: bf16[4,8,32], index: 4, kind: input, shape index: {}]   ;;  %s3100_s5 = inlined_call_operand.hbm [shape: bf16[32,64], index: 5, kind: input, shape index: {}]   ;;  %s3101_s6 = inlined_call_operand.hbm [shape: f32[1,64], index: 6, kind: input, shape index: {}]   ;;  %s3102_s7 = inlined_call_operand.hbm [shape: bf16[64,32], index: 7, kind: input, shape index: {}]   ;;  %s3103_s8 = inlined_call_operand.hbm [shape: f32[8,32], index: 8, kind: input, shape index: {}]   ;;  %s3104_s9 = inlined_call_operand.hbm [shape: f32[2,9,32], index: 9, kind: output, shape index: {}]  }
   0x1   :  { %3109 = sst [smem:[#allocation24_spill]] %s3096_s1 }
   0x2   :  { %3110 = sst [smem:[#allocation25_spill]] %s3104_s9 }
   0x3   :  { %14 = vsyncpa [#allocation3], 0 }
   0x4   :  { %16 = vsyncpa [#allocation3 + $0x1], 0 }
   0x5   :  { %17 = vsyncpa [#allocation6], 0 }
   0x6   :  { %18 = vsyncpa [#allocation9], 0 }
   0x7   :  { %19 = vsyncpa [#allocation12], 0 }
   0x8   :  { %20 = vsyncpa [#allocation15], 0 }
   0x9   :  { %21 = vsyncpa [#allocation4], 0 }
   0xa   :  { %23 = vsyncpa [#allocation4 + $0x1], 0  ;;  %s2541_s30 = smov 0   ;;  %s2543_s10 = smov 0  }
   0xb   :  { %s2545_s11 = smov 0   ;;  %s2547_s12 = smov 0  }
   0xc LB: > { %s2469_s13 = smov [#allocation5]   ;;  %s2562_s15 = sadd.s32 4294967295, %s2467_s12   ;;  %s2467_s12 = sphi %s2547_s12, %s3137_s12   ;;  %s2463_s11 = sphi %s2545_s11, %s3136_s11   ;;  %s2459_s10 = sphi %s2543_s10, %s3135_s10   ;;  %s2455_s30 = sphi %s2541_s30, %s3134_s30  }
   0xd   : > { %s266_s14 = sshll.u32 %s2469_s13, 4  ;;  %p1722_p0 = scmp.ge.s32.totalorder %s2467_s12, 1  ;;  %s2567_s14 = int_to_ptr.vmem [resolvable:$true] %s266_s14 }
   0xe   : > { %p3106_p1 = scmp.eq.s32.totalorder %s2562_s15, 0  ;;  %p254_p2 = scmp.lt.s32.totalorder %s2467_s12, 3 }
   0xf   : > { %s2470_s17 = smov [#allocation8]   ;;  %s2471_s20 = smov [#allocation11]  }
  0x10   : > { %p2569_p3 = pnand %p1722_p0, %p254_p2  ;;  %s292_s18 = sshll.u32 %s2470_s17, 4  ;;  %s2582_s18 = int_to_ptr.vmem [resolvable:$true] %s292_s18 }
  0x11   : > { %s318_s21 = sshll.u32 %s2471_s20, 4  ;;  %s3113_s1 = sld [smem:[#allocation24_spill]]  ;;  %s2584_s21 = int_to_ptr.vmem [resolvable:$true] %s318_s21 }
  0x12   : > { %s3111_s16 = scalar_select %p2569_p3, 1, 0 }
  0x13   : > { %p1976_p5 = pneg %p2569_p3 }
  0x15   : > { %p2578_p6 = pnand %p1976_p5, %p3106_p1 }
  0x17   : > { %s2131_s24 = scalar_lea.hbm %s3113_s1, 256  ;;  %p2594_p8 = pneg %p2578_p6 }
  0x18   : > { %p2132_p7 = scmp.ne.s32.totalorder %s3113_s1, %s2131_s24  ;;  %p2138_p11 = scmp.lt.u32.totalorder %s2131_s24, %s3113_s1 }
  0x1a   : > { %p2134_p9 = pnand %p2594_p8, %p2132_p7 }
  0x1c   : > { %p2135_p10 = pneg %p2134_p9 }
  0x1e   : > { %p2140_p12 = pnand %p2138_p11, %p2135_p10 }
  0x20   : > { %2143 = shalt.err (!%p2140_p12)
}
  0x21   : > { %s2144_s13 = scalar_lea.vmem %s2567_s14, 256  ;;  %p2152_p5 = scmp.lt.s32.totalorder %s2567_s14, %s2567_s14 }
  0x22   : > { %p2145_p13 = scmp.ne.s32.totalorder %s2567_s14, %s2144_s13  ;;  %p2153_p4 = scmp.lt.s32.totalorder %s2144_s13, %s2144_s13 }
  0x24   : > { %p2147_p0 = pnand %p2145_p13, %p2594_p8  ;;  %p2154_p7 = por %p2153_p4, %p2152_p5 }
  0x26   : > { %p2148_p2 = pneg %p2147_p0 }
  0x28   : > { %p2155_p9 = pnand %p2154_p7, %p2148_p2 }
  0x2a   : > { %2158 = shalt.err (!%p2155_p9)
}
  0x2b   : > { %s2472_s17 = smov 64   ;;  %s2473_s20 = smov 4  }
  0x2c   : > { %1979 = dma.hbm_to_vmem [thread:$0]  (!%p2578_p6), %s3113_s1, 256, %s2567_s14, [#allocation6], %s2472_s17, %s2472_s17, %s2473_s20  }
  0x2d   : > { %s2159_s26 = scalar_lea.hbm %s3098_s3, 256 }
  0x2e   : > { %p2160_p4 = scmp.ne.s32.totalorder %s3098_s3, %s2159_s26  ;;  %p2166_p12 = scmp.lt.u32.totalorder %s2159_s26, %s3098_s3 }
  0x30   : > { %p2162_p10 = pnand %p2160_p4, %p2594_p8 }
  0x32   : > { %p2163_p11 = pneg %p2162_p10 }
  0x34   : > { %p2168_p13 = pnand %p2166_p12, %p2163_p11 }
  0x36   : > { %2171 = shalt.err (!%p2168_p13)
}
  0x37   : > { %s2172_s14 = scalar_lea.vmem %s2582_s18, 256  ;;  %p2180_p7 = scmp.lt.s32.totalorder %s2582_s18, %s2582_s18 }
  0x38   : > { %p2173_p0 = scmp.ne.s32.totalorder %s2582_s18, %s2172_s14  ;;  %p2181_p9 = scmp.lt.s32.totalorder %s2172_s14, %s2172_s14 }
  0x3a   : > { %p2175_p2 = pnand %p2173_p0, %p2594_p8  ;;  %p2182_p4 = por %p2181_p9, %p2180_p7 }
  0x3c   : > { %p2176_p5 = pneg %p2175_p2 }
  0x3e   : > { %p2183_p10 = pnand %p2182_p4, %p2176_p5 }
  0x40   : > { %2186 = shalt.err (!%p2183_p10)
}
  0x41   : > { %1985 = dma.hbm_to_vmem [thread:$0]  (!%p2578_p6), %s3098_s3, 256, %s2582_s18, [#allocation9], %s2472_s17, %s2472_s17, %s2473_s20  }
  0x42   : > { %s2187_s25 = scalar_lea.hbm %s3100_s5, 256 }
  0x43   : > { %p2188_p11 = scmp.ne.s32.totalorder %s3100_s5, %s2187_s25  ;;  %p2194_p0 = scmp.lt.u32.totalorder %s2187_s25, %s3100_s5 }
  0x45   : > { %p2190_p12 = pnand %p2188_p11, %p2594_p8 }
  0x47   : > { %p2191_p13 = pneg %p2190_p12 }
  0x49   : > { %p2196_p2 = pnand %p2194_p0, %p2191_p13 }
  0x4b   : > { %2199 = shalt.err (!%p2196_p2)
}
  0x4c   : > { %s2200_s18 = scalar_lea.vmem %s2584_s21, 256  ;;  %p2208_p4 = scmp.lt.s32.totalorder %s2584_s21, %s2584_s21 }
  0x4d   : > { %p2201_p5 = scmp.ne.s32.totalorder %s2584_s21, %s2200_s18  ;;  %p2209_p10 = scmp.lt.s32.totalorder %s2200_s18, %s2200_s18 }
  0x4f   : > { %p2203_p7 = pnand %p2201_p5, %p2594_p8  ;;  %p2210_p11 = por %p2209_p10, %p2208_p4 }
  0x51   : > { %p2204_p9 = pneg %p2203_p7 }
  0x53   : > { %p2211_p12 = pnand %p2210_p11, %p2204_p9 }
  0x55   : > { %2214 = shalt.err (!%p2211_p12)
}
  0x56   : > { %1991 = dma.hbm_to_vmem [thread:$0]  (!%p2578_p6), %s3100_s5, 256, %s2584_s21, [#allocation12], %s2472_s17, %s2472_s17, %s2473_s20  }
  0x57   : > { %s2474_s22 = smov [#allocation14]   ;;  %s2475_s24 = smov [#allocation7]  }
  0x58   : > { %s342_s23 = sshll.u32 %s2474_s22, 4  ;;  %s279_s25 = sshll.u32 %s2475_s24, 4  ;;  %s343_s23 = int_to_ptr.vmem [resolvable:$true] %s342_s23  ;;  %s280_s25 = int_to_ptr.vmem [resolvable:$true] %s279_s25 }
  0x59   : > { %s2215_s29 = scalar_lea.hbm %s3102_s7, 512 }
  0x5a   : > { %p2216_p13 = scmp.ne.s32.totalorder %s3102_s7, %s2215_s29  ;;  %p2222_p5 = scmp.lt.u32.totalorder %s2215_s29, %s3102_s7 }
  0x5c   : > { %p2218_p0 = pnand %p2216_p13, %p2594_p8 }
  0x5e   : > { %p2219_p2 = pneg %p2218_p0 }
  0x60   : > { %p2224_p7 = pnand %p2222_p5, %p2219_p2 }
  0x62   : > { %2227 = shalt.err (!%p2224_p7)
}
  0x63   : > { %s2228_s21 = scalar_lea.vmem %s343_s23, 512  ;;  %p2236_p11 = scmp.lt.s32.totalorder %s343_s23, %s343_s23 }
  0x64   : > { %p2229_p9 = scmp.ne.s32.totalorder %s343_s23, %s2228_s21  ;;  %p2237_p12 = scmp.lt.s32.totalorder %s2228_s21, %s2228_s21 }
  0x66   : > { %p2231_p4 = pnand %p2229_p9, %p2594_p8  ;;  %p2238_p1 = por %p2237_p12, %p2236_p11 }
  0x68   : > { %p2232_p10 = pneg %p2231_p4 }
  0x6a   : > { %p2239_p3 = pnand %p2238_p1, %p2232_p10 }
  0x6c   : > { %2242 = shalt.err (!%p2239_p3)
}
  0x6d   : > { %1997 = dma.hbm_to_vmem [thread:$0]  (!%p2578_p6), %s3102_s7, 512, %s343_s23, [#allocation15], %s2472_s17, %s2472_s17, %s2473_s20  }
  0x6e   : > { %s2243_s26 = scalar_lea.hbm %s3097_s2, 256 }
  0x6f   : > { %p2244_p1 = scmp.ne.s32.totalorder %s3097_s2, %s2243_s26  ;;  %p2250_p0 = scmp.lt.u32.totalorder %s2243_s26, %s3097_s2 }
  0x71   : > { %p2246_p3 = pnand %p2244_p1, %p2594_p8 }
  0x73   : > { %p2247_p13 = pneg %p2246_p3 }
  0x75   : > { %p2252_p2 = pnand %p2250_p0, %p2247_p13 }
  0x77   : > { %2255 = shalt.err (!%p2252_p2)
}
  0x78   : > { %s2256_s14 = scalar_lea.vmem %s280_s25, 256  ;;  %p2264_p4 = scmp.lt.s32.totalorder %s280_s25, %s280_s25 }
  0x79   : > { %p2257_p5 = scmp.ne.s32.totalorder %s280_s25, %s2256_s14  ;;  %p2265_p10 = scmp.lt.s32.totalorder %s2256_s14, %s2256_s14 }
  0x7b   : > { %p2259_p7 = pnand %p2257_p5, %p2594_p8  ;;  %p2266_p11 = por %p2265_p10, %p2264_p4 }
  0x7d   : > { %p2260_p9 = pneg %p2259_p7 }
  0x7f   : > { %p2267_p12 = pnand %p2266_p11, %p2260_p9 }
  0x81   : > { %2270 = shalt.err (!%p2267_p12)
}
  0x82   : > { %1982 = dma.hbm_to_vmem [thread:$0]  (!%p2578_p6), %s3097_s2, 256, %s280_s25, [#allocation6], %s2472_s17, %s2472_s17, %s2473_s20  }
  0x83   : > { %s2476_s1 = smov [#allocation10]   ;;  %s2477_s22 = smov [#allocation13]  }
  0x84   : > { %s305_s9 = sshll.u32 %s2476_s1, 4  ;;  %s332_s24 = sshll.u32 %s2477_s22, 4  ;;  %s306_s9 = int_to_ptr.vmem [resolvable:$true] %s305_s9  ;;  %s333_s24 = int_to_ptr.vmem [resolvable:$true] %s332_s24 }
  0x85   : > { %s2271_s29 = scalar_lea.hbm %s3099_s4, 256 }
  0x86   : > { %p2272_p1 = scmp.ne.s32.totalorder %s3099_s4, %s2271_s29  ;;  %p2278_p0 = scmp.lt.u32.totalorder %s2271_s29, %s3099_s4 }
  0x88   : > { %p2274_p3 = pnand %p2272_p1, %p2594_p8 }
  0x8a   : > { %p2275_p13 = pneg %p2274_p3 }
  0x8c   : > { %p2280_p2 = pnand %p2278_p0, %p2275_p13 }
  0x8e   : > { %2283 = shalt.err (!%p2280_p2)
}
  0x8f   : > { %s2284_s25 = scalar_lea.vmem %s306_s9, 256  ;;  %p2292_p4 = scmp.lt.s32.totalorder %s306_s9, %s306_s9 }
  0x90   : > { %p2285_p5 = scmp.ne.s32.totalorder %s306_s9, %s2284_s25  ;;  %p2293_p10 = scmp.lt.s32.totalorder %s2284_s25, %s2284_s25 }
  0x92   : > { %p2287_p7 = pnand %p2285_p5, %p2594_p8  ;;  %p2294_p11 = por %p2293_p10, %p2292_p4 }
  0x94   : > { %p2288_p9 = pneg %p2287_p7 }
  0x96   : > { %p2295_p12 = pnand %p2294_p11, %p2288_p9 }
  0x98   : > { %2298 = shalt.err (!%p2295_p12)
}
  0x99   : > { %1988 = dma.hbm_to_vmem [thread:$0]  (!%p2578_p6), %s3099_s4, 256, %s306_s9, [#allocation9], %s2472_s17, %s2472_s17, %s2473_s20  }
  0x9a   : > { %s2299_s28 = scalar_lea.hbm %s3101_s6, 16 }
  0x9b   : > { %p2300_p1 = scmp.ne.s32.totalorder %s3101_s6, %s2299_s28  ;;  %p2306_p0 = scmp.lt.u32.totalorder %s2299_s28, %s3101_s6 }
  0x9d   : > { %p2302_p3 = pnand %p2300_p1, %p2594_p8 }
  0x9f   : > { %p2303_p13 = pneg %p2302_p3 }
  0xa1   : > { %p2308_p2 = pnand %p2306_p0, %p2303_p13 }
  0xa3   : > { %2311 = shalt.err (!%p2308_p2)
}
  0xa4   : > { %s2312_s23 = scalar_lea.vmem %s333_s24, 16  ;;  %s2319_s17 = scalar_lea.vmem %s333_s24, 32 }
  0xa5   : > { %p2313_p5 = scmp.ne.s32.totalorder %s333_s24, %s2312_s23  ;;  %p2320_p4 = scmp.lt.s32.totalorder %s333_s24, %s333_s24 }
  0xa6   : > { %p2321_p10 = scmp.lt.s32.totalorder %s2319_s17, %s2312_s23 }
  0xa7   : > { %p2315_p7 = pnand %p2313_p5, %p2594_p8 }
  0xa8   : > { %p2322_p11 = por %p2321_p10, %p2320_p4 }
  0xa9   : > { %p2316_p9 = pneg %p2315_p7 }
  0xab   : > { %p2323_p12 = pnand %p2322_p11, %p2316_p9 }
  0xad   : > { %2326 = shalt.err (!%p2323_p12)
}
  0xae   : > { %1994 = dma.hbm_to_vmem [thread:$0]  (!%p2578_p6), %s3101_s6, 16, %s333_s24, [#allocation12]  }
  0xaf   : > { %s2478_s25 = smov [#allocation16]   ;;  %s2327_s26 = scalar_lea.hbm %s3103_s8, 128 }
  0xb0   : > { %s356_s21 = sshll.u32 %s2478_s25, 4  ;;  %p2328_p1 = scmp.ne.s32.totalorder %s3103_s8, %s2327_s26  ;;  %s357_s21 = int_to_ptr.vmem [resolvable:$true] %s356_s21 }
  0xb1   : > { %p2334_p0 = scmp.lt.u32.totalorder %s2327_s26, %s3103_s8 }
  0xb2   : > { %p2330_p3 = pnand %p2328_p1, %p2594_p8 }
  0xb4   : > { %p2331_p13 = pneg %p2330_p3 }
  0xb6   : > { %p2336_p2 = pnand %p2334_p0, %p2331_p13 }
  0xb8   : > { %2339 = shalt.err (!%p2336_p2)
}
  0xb9   : > { %s2340_s24 = scalar_lea.vmem %s357_s21, 128  ;;  %p2348_p4 = scmp.lt.s32.totalorder %s357_s21, %s357_s21 }
  0xba   : > { %p2341_p5 = scmp.ne.s32.totalorder %s357_s21, %s2340_s24  ;;  %p2349_p10 = scmp.lt.s32.totalorder %s2340_s24, %s2340_s24 }
  0xbc   : > { %p2343_p7 = pnand %p2341_p5, %p2594_p8  ;;  %p2350_p11 = por %p2349_p10, %p2348_p4 }
  0xbe   : > { %p2344_p9 = pneg %p2343_p7 }
  0xc0   : > { %p2351_p12 = pnand %p2350_p11, %p2344_p9 }
  0xc2   : > { %2354 = shalt.err (!%p2351_p12)
}
  0xc3   : > { %2000 = dma.hbm_to_vmem [thread:$0]  (!%p2578_p6), %s3103_s8, 128, %s357_s21, [#allocation15]  }
  0xc4   : > { %s1721_s27 = sadd.s32 4294967294, %s2467_s12   ;;  %s2771_s19 = sadd.s32 1, %s2467_s12  }
  0xc5   : > { %s33_s17 = ssub.s32 %s2467_s12, %s2771_s19  ;;  %s36_s20 = sadd.s32 1, %s2463_s11 }
  0xc6   : > { %p34_p8 = scmp.eq.s32.totalorder %s33_s17, 0  ;;  %p43_p1 = scmp.ne.s32.totalorder %s2463_s11, %s2459_s10 }
  0xc7   : > { %p44_p3 = scmp.eq.s32.totalorder %s2467_s12, 0  ;;  %p49_p13 = scmp.ne.s32.totalorder %s2459_s10, %s2455_s30 }
  0xc8   : > { %s2782_s9 = scalar_select %p34_p8, %s2463_s11, %s36_s20  }
  0xc9   : > { %p2784_p0 = por %p44_p3, %p43_p1  ;;  %p3116_p2 = scmp.eq.s32.totalorder %s2562_s15, 0 }
  0xca   : > { %p241_p5 = scmp.eq.s32.totalorder %s2562_s15, 1  ;;  %p247_p7 = scmp.eq.s32.totalorder %s1721_s27, 1 }
  0xcb   : > { %p2790_p6 = por %p3116_p2, %p49_p13  ;;  %p2017_p9 = scmp.lt.s32.totalorder %s2467_s12, 2 }
  0xcc   : > { %s367_s1 = sand.u32 1, %s2463_s11   ;;  %p2797_p4 = por %p241_p5, %p43_p1 }
  0xcd   : > { %p2801_p10 = por %p247_p7, %p49_p13  ;;  %s1732_s28 = sshll.u32 %s367_s1, 4 }
  0xce   : > { %s3118_s22 = scalar_select %p2797_p4, 1, 0 }
  0xcf   : > { %s3119_s26 = scalar_select %p2801_p10, 1, 0 }
  0xd0   : > { %s1781_s29 = sshll.u32 %s2467_s12, 8  ;;  %s371_s14 = scalar_lea.vmem [#allocation2], %s1732_s28 }
  0xd1   : > { %s2809_s24 = scalar_lea.hbm %s3095_s0, %s1781_s29  ;;  %s378_s23 = sshll.u32 %s371_s14, 4  ;;  %s2811_s23 = int_to_ptr.vmem [resolvable:$true] %s378_s23 }
  0xd2   : > { %p2815_p11 = pnand %p2017_p9, %p2784_p0  ;;  %s2819_s17 = scalar_lea.sflag [#allocation3], %s367_s1 }
  0xd3   : > { %s2355_s20 = scalar_lea.hbm %s2809_s24, 256  ;;  %s2360_s25 = scalar_lea.hbm %s3095_s0, 512 }
  0xd4   : > { %p2356_p12 = scmp.ne.s32.totalorder %s2809_s24, %s2355_s20  ;;  %p2357_p8 = pneg %p2815_p11 }
  0xd5   : > { %p2361_p13 = scmp.lt.u32.totalorder %s2809_s24, %s3095_s0  ;;  %p2362_p0 = scmp.lt.u32.totalorder %s2360_s25, %s2355_s20 }
  0xd6   : > { %p2358_p1 = pnand %p2357_p8, %p2356_p12  ;;  %p2364_p5 = scmp.lt.u32.totalorder %s2355_s20, %s2809_s24 }
  0xd7   : > { %p2363_p2 = por %p2362_p0, %p2361_p13 }
  0xd8   : > { %p2359_p3 = pneg %p2358_p1 }
  0xd9   : > { %p2365_p7 = por %p2364_p5, %p2363_p2 }
  0xdb   : > { %p2366_p9 = pnand %p2365_p7, %p2359_p3 }
  0xdd   : > { %2369 = shalt.err (!%p2366_p9)
}
  0xde   : > { %s2370_s1 = scalar_lea.vmem %s2811_s23, 256  ;;  %s2479_s14 = smov [#allocation2]  }
  0xdf   : > { %p2371_p12 = scmp.ne.s32.totalorder %s2811_s23, %s2370_s1  ;;  %s2375_s28 = sshll.u32 %s2479_s14, 4  ;;  %s2376_s28 = int_to_ptr.vmem [resolvable:$false] %s2375_s28 }
  0xe0   : > { %s2377_s29 = scalar_lea.vmem %s2376_s28, 512  ;;  %p2378_p4 = scmp.lt.s32.totalorder %s2811_s23, %s2376_s28 }
  0xe1   : > { %p2373_p1 = pnand %p2371_p12, %p2357_p8  ;;  %p2379_p13 = scmp.lt.s32.totalorder %s2377_s29, %s2370_s1 }
  0xe3   : > { %p2374_p10 = pneg %p2373_p1  ;;  %p2380_p0 = por %p2379_p13, %p2378_p4 }
  0xe5   : > { %p2381_p2 = pnand %p2380_p0, %p2374_p10 }
  0xe7   : > { %2384 = shalt.err (!%p2381_p2)
}
  0xe8   : > { %s2480_s20 = smov 128   ;;  %s2481_s25 = smov 8  }
  0xe9   : > { %2004 = dma.hbm_to_vmem [thread:$0]  (!%p2815_p11), %s2809_s24, 256, %s2811_s23, %s2819_s17, %s2480_s20, %s2480_s20, %s2481_s25  }
  0xea   : > { %p3121_p8 = scmp.ne.s32.totalorder %s3111_s16, 0 }
  0xeb   : > { %s2850_s13 = sand.u32 (!%p3121_p8), 1, %s2459_s10  }
  0xec   : > { %390 = sbr.rel (%p3121_p8) target bundleno = 3373 (0xd2d), region = 56  ;;  %s1736_s18 = sshll.u32 (!%p3121_p8), %s2850_s13, 4 }
  0xed   : > { %s393_s1 = scalar_lea.sflag (!%p3121_p8), [#allocation3], %s2850_s13  ;;  %s396_s14 = scalar_lea.vmem (!%p3121_p8), [#allocation2], %s1736_s18 }
  0xf3   : > { %2430 = dma.done.wait (%p2790_p6), %s393_s1, 256  }
  0xf4   : > { %2432 = vsyncadd (%p2790_p6), %s393_s1, 4294967040  ;;  %p3122_p4 = scmp.eq.s32.totalorder %s2562_s15, 0 }
  0xf6   : > { %2434 = dma.done.wait (%p3122_p4), [#allocation6], 512   ;;  %p3123_p10 = pmov %p3122_p4 }
  0xf7   : > { %p3124_p11 = pmov %p3122_p4 }
  0xf8   : > { %2436 = vsyncadd (%p3123_p10), [#allocation6], 4294966784 }
  0xf9   : > { %2438 = dma.done.wait (%p3124_p11), [#allocation9], 512   ;;  %p3125_p3 = pmov %p3122_p4 }
  0xfb   : > { %2440 = vsyncadd (%p3125_p3), [#allocation9], 4294966784  ;;  %p3126_p5 = pmov %p3125_p3 }
  0xfc   : > { %p3127_p7 = pmov %p3125_p3 }
  0xfd   : > { %2442 = dma.done.wait (%p3126_p5), [#allocation12], 272  }
  0xfe   : > { %2444 = vsyncadd (%p3127_p7), [#allocation12], 4294967024  ;;  %p3128_p6 = pmov %p3125_p3 }
  0xff   : > { %p3129_p9 = pmov %p3125_p3 }
 0x100   : > { %2446 = dma.done.wait (%p3128_p6), [#allocation15], 640  }
 0x101   : > { %2448 = vsyncadd (%p3129_p9), [#allocation15], 4294966656  ;;  %v2482_v0 = vmov 0.0   ;;  %vm2483_vm0 = vmmov 0   ;;  %v2079_v1 = vld [vmem:[#allocation5] sm:$0xff]   ;;  %v2080_v2 = vld [vmem:[#allocation5 + $0x8] sm:$0xff]  }
 0x102   : > { %1824 = vmatprep.subr.bf16.mxu1 %v2482_v0  ;;  %1828 = vmatprep.mubr.msk.bf16.mxu1 %vm2483_vm0, %v2482_v0  ;;  %v2882_v3 = vld [vmem:[%s396_s14] sm:$0xff]  ;;  %v2884_v4 = vld [vmem:[%s396_s14 + $0x8] sm:$0x1]  ;;  %vm484_vm1 = vcmask 261120   ;;  %vm646_vm2 = vcmask 64512   ;;  %s2484_s16 = smov 120  }
 0x103   : > { %1840 = vmatprep.subr.bf16.mxu0 %v2482_v0  ;;  %1844 = vmatprep.mubr.msk.bf16.mxu0 %vm2483_vm0, %v2482_v0  ;;  %v2081_v5 = vld [vmem:[#allocation7] sm:$0xff]   ;;  %v466_v6 = vpack.c.bf16 %v2884_v4, %v2882_v3  ;;  %v2082_v7 = vld [vmem:[#allocation7 + $0x8] sm:$0xff]   ;;  %v2083_v19 = vld [vmem:[#allocation8] sm:$0xff]   ;;  %vm696_vm3 = vcmask 72704   ;;  %vm700_vm4 = vcmask 65536   ;;  %s2485_s21 = smov 112  }
 0x104   : > { %1825 = vmatpush3.bf16.msra.mxu1 %v2079_v1  ;;  %1841 = vmatpush3.bf16.msra.mxu0 %v2083_v19  ;;  %v2084_v20 = vld [vmem:[#allocation8 + $0x8] sm:$0xff]   ;;  %vm724_vm5 = vcmask 1043456   ;;  %vm725_vm6 = vcmask 1044480   ;;  %v2486_v55 = vmov 65535   ;;  %s2487_s24 = smov 104   ;;  %vm1488_vm7 = vcmask 523264  }
 0x105   : > { %1826 = vmatprep.subr.bf16.mxu1 %v2482_v0  ;;  %1842 = vmatprep.subr.bf16.mxu0 %v2482_v0  ;;  %v726_v56 = vsel %vm724_vm5, 4294967295, %v2486_v55  ;;  %s1782_s23 = sshll.u32 %s2562_s15, 8  ;;  %s462_s27 = scalar_lea.vmem [#allocation17], %s1736_s18  ;;  %vm1556_vm8 = vcmask 253952  }
 0x106   : > { %v2934_v57 = vsel %vm725_vm6, %v726_v56, 0  ;;  %s1572_s17 = sshll.u32 %s462_s27, 4  ;;  %s3130_s20 = sld [smem:[#allocation25_spill]]  ;;  %s3050_s17 = int_to_ptr.vmem [resolvable:$true] %s1572_s17 }
 0x107   : > { %s1559_s15 = scalar_lea.sflag [#allocation4], %s2850_s13  ;;  %s2385_s18 = scalar_lea.vmem %s3050_s17, 256 }
 0x108   : > { %1827 = vmatpush3.bf16.msra.mxu1 %v2080_v2  ;;  %1843 = vmatpush3.bf16.msra.mxu0 %v2084_v20  ;;  %p2386_p12 = scmp.ne.s32.totalorder %s3050_s17, %s2385_s18  ;;  %p3131_p1 = scmp.ne.s32.totalorder %s3118_s22, 0 }
 0x109   : > { %1832 = vmatprep.subr.bf16.mxu1 %v2482_v0  ;;  %1854 = vmatprep.subr.bf16.mxu0 %v2482_v0  ;;  %s2488_s1 = smov [#allocation17]  }
 0x10a   : > { %p2387_p13 = pnand %p2386_p12, %p3131_p1  ;;  %s2389_s14 = sshll.u32 %s2488_s1, 4  ;;  %s2390_s14 = int_to_ptr.vmem [resolvable:$false] %s2389_s14 }
 0x10b   : > { %1829 = vmatmul.mubr.msk.bf16.vlgmr.msra.gmra.mrb[0].mxu1 %vm484_vm1, %v466_v6  ;;  %1845 = vmatmul.mubr.msk.bf16.vlgmr.msra.gmra.mrb[0].mxu0 %vm484_vm1, %v466_v6  ;;  %p2392_p2 = scmp.lt.s32.totalorder %s3050_s17, %s2390_s14 }
 0x10c   : > { %1833 = vmatpush3.bf16.msra.mxu1 %v2081_v5  ;;  %1836 = vmatprep.mubr.msk.bf16.mxu1 %vm2483_vm0, %v2482_v0  ;;  %s3048_s25 = scalar_lea.hbm %s3130_s20, %s1782_s23  ;;  %p2388_p0 = pneg %p2387_p13 }
 0x10d   : > { %1834 = vmatprep.subr.bf16.mxu1 %v2482_v0  ;;  %1856 = vmatprep.mubr.msk.bf16.mxu0 %vm2483_vm0, %v2482_v0 }
 0x110   : > { %1835 = vmatpush3.bf16.msra.mxu1 %v2082_v7 }
 0x111   : > { %1848 = vmatprep.subr.bf16.mxu1 %v2482_v0 }
 0x113   : > { %1837 = vmatmul.mubr.msk.bf16.vlgmr.msra.gmra.mrb[4].mxu1 %vm484_vm1, %v466_v6 }
 0x114   : > { %1850 = vmatprep.mubr.msk.bf16.mxu1 %vm2483_vm0, %v2482_v0 }
 0x1de   : > { %v522_v8 = vpop.f32.mrb[0].mxu1  ;;  %v636_v46 = vpop.f32.mrb[0].mxu0 }
 0x1df   : > { %v1830_v9 = vpop.f32.mrb[1].mxu1  ;;  %v1846_v47 = vpop.f32.mrb[1].mxu0 }
 0x1e0   : > { %v525_v10 = vpop.f32.mrb[2].mxu1  ;;  %v639_v48 = vpop.f32.mrb[2].mxu0 }
 0x1e1   : > { %v2898_v11 = vpack.c.bf16 %v525_v10, %v522_v8  ;;  %v1831_v12 = vpop.f32.mrb[3].mxu1  ;;  %v2929_v49 = vpack.c.bf16 %v639_v48, %v636_v46  ;;  %v1847_v50 = vpop.f32.mrb[3].mxu0 }
 0x1e3   : > { %v729_v58 = vand.u32 %v2934_v57, %v2929_v49 }
 0x1e5   : > { %1855 = vmatpush3.bf16.msra.mxu0 %v729_v58 }
 0x1e6   : > { %v579_v13 = vpop.f32.mrb[4].mxu1  ;;  %1866 = vmatprep.subr.bf16.mxu0 %v2482_v0 }
 0x1e7   : > { %v1838_v14 = vpop.f32.mrb[5].mxu1 }
 0x1e8   : > { %v582_v15 = vpop.f32.mrb[6].mxu1 }
 0x1e9   : > { %v2900_v16 = vpack.c.bf16 %v582_v15, %v579_v13  ;;  %v1839_v17 = vpop.f32.mrb[7].mxu1 }
 0x1ea   : > { %v904_v17 = vld [vmem:[#allocation10 + $0x4] sm:$0xf] }
 0x1eb   : > { %778 = vrot.lane.b32.xlu0 %v2900_v16, %s2484_s16  ;;  %v651_v18 = vsel %vm646_vm2, %v2900_v16, 0 }
 0x1ec   : > { %1849 = vmatpush3.bf16.xpose.msra.mxu1 %v651_v18  ;;  %v909_v18 = vsel %vm724_vm5, %v904_v17, 0 }
 0x1ed   : > { %1860 = vmatprep.subr.bf16.mxu1 %v2482_v0 }
 0x1ef   : > { %775 = vrot.lane.b32.xlu0 %v2898_v11, %s2484_s16 }
 0x1f3   : > { %1851 = vmatmul.mubr.msk.bf16.vlgmr.msra.gmra.mrb[8].mxu1 %vm646_vm2, %v2898_v11 }
 0x1f4   : > { %1862 = vmatprep.mubr.msk.bf16.mxu1 %vm2483_vm0, %v2482_v0 }
 0x25d   : > { %v779_v21 = vpop.permute.xlu0 %778 }
 0x25e   : > { %v784_v22 = vsel %vm646_vm2, %v779_v21, 0 }
 0x25f   : > { %1861 = vmatpush3.bf16.xpose.msra.mxu1 %v784_v22 }
 0x260   : > { %1872 = vmatprep.subr.bf16.mxu1 %v2482_v0 }
 0x261   : > { %v776_v23 = vpop.permute.xlu0 %775 }
 0x266   : > { %1863 = vmatmul.mubr.msk.bf16.vlgmr.msra.gmra.mrb[12].mxu1 %vm646_vm2, %v776_v23 }
 0x267   : > { %1874 = vmatprep.mubr.msk.bf16.mxu1 %vm2483_vm0, %v2482_v0  ;;  %1873 = vmatpush3.bf16.msra.mxu1 %v909_v18 }
 0x268   : > { %1884 = vmatprep.subr.bf16.mxu1 %v2482_v0 }
 0x2c6   : > { %v687_v24 = vpop.f32.mrb[8].mxu1 }
 0x2c7   : > { %v694_v25 = vmul.f32 0.35355338, %v687_v24  ;;  %v1852_v26 = vpop.f32.mrb[9].mxu1 }
 0x2c8   : > { %v690_v27 = vpop.f32.mrb[10].mxu1 }
 0x2c9   : > { %v695_v28 = vmul.f32 0.35355338, %v690_v27  ;;  %v1853_v29 = vpop.f32.mrb[11].mxu1  ;;  %v697_v30 = vsel %vm696_vm3, %v694_v25, -inf }
 0x2ca   : > { %698 = vmax.xlane.f32.xlu1 %v697_v30 }
 0x2cb   : > { %v701_v31 = vsel %vm700_vm4, %v695_v28, -inf }
 0x2ce   : > { %702 = vmax.xlane.f32.xlu1 %v701_v31 }
 0x339   : > { %v820_v32 = vpop.f32.mrb[12].mxu1 }
 0x33a   : > { %v827_v33 = vmul.f32 0.35355338, %v820_v32  ;;  %v1864_v34 = vpop.f32.mrb[13].mxu1 }
 0x33b   : > { %v823_v35 = vpop.f32.mrb[14].mxu1 }
 0x33c   : > { %v828_v36 = vmul.f32 0.35355338, %v823_v35  ;;  %v1865_v37 = vpop.f32.mrb[15].mxu1  ;;  %v829_v38 = vsel %vm696_vm3, %v827_v33, -inf }
 0x33d   : > { %830 = vmax.xlane.f32.xlu0 %v829_v38 }
 0x33e   : > { %v832_v39 = vsel %vm700_vm4, %v828_v36, -inf }
 0x33f   : > { %833 = vmax.xlane.f32.xlu1 %v832_v39 }
 0x353   : > { %1001 = vrot.lane.b32.xlu0 %v2900_v16, %s2485_s21 }
 0x357   : > { %v699_v40 = vpop.xlane.xlu1 %698 }
 0x358   : > { %v704_v41 = vsub.f32 %v694_v25, %v699_v40  ;;  %v773_v25 = vld [vmem:[#allocation10] sm:$0xf] }
 0x359   : > { %v956_v29 = vsel %vm724_vm5, %v773_v25, 0 }
 0x35a   : > { %v706_v42 = vmul.f32 1.442695, %v704_v41 }
 0x35b   : > { %v703_v43 = vpop.xlane.xlu1 %702 }
 0x35c   : > { %2091 = vpow2.f32 %v706_v42  ;;  %v705_v44 = vsub.f32 %v695_v28, %v703_v43 }
 0x35e   : > { %v708_v45 = vmul.f32 1.442695, %v705_v44 }
 0x360   : > { %2093 = vpow2.f32 %v708_v45 }
 0x366   : > { %v2092_v51 = vpop.eup %2091 }
 0x367   : > { %v710_v52 = vsel %vm696_vm3, %v2092_v51, 0.0 }
 0x368   : > { %711 = vadd.xlane.f32.xlu1 %v710_v52 }
 0x36a   : > { %v2094_v53 = vpop.eup %2093 }
 0x36b   : > { %v713_v54 = vsel %vm700_vm4, %v2094_v53, 0.0 }
 0x36c   : > { %714 = vadd.xlane.f32.xlu1 %v713_v54 }
 0x3ca   : > { %v831_v59 = vpop.xlane.xlu0 %830 }
 0x3cb   : > { %v835_v60 = vsub.f32 %v827_v33, %v831_v59 }
 0x3cc   : > { %v834_v61 = vpop.xlane.xlu1 %833 }
 0x3cd   : > { %v837_v62 = vmul.f32 1.442695, %v835_v60  ;;  %v836_v63 = vsub.f32 %v828_v36, %v834_v61 }
 0x3ce   : > { %v1002_v37 = vpop.permute.xlu0 %1001 }
 0x3cf   : > { %2095 = vpow2.f32 %v837_v62  ;;  %v839_v1 = vmul.f32 1.442695, %v836_v63  ;;  %v1007_v41 = vsel %vm646_vm2, %v1002_v37, 0 }
 0x3d1   : > { %2097 = vpow2.f32 %v839_v1 }
 0x3d9   : > { %v2096_v2 = vpop.eup %2095 }
 0x3da   : > { %v841_v5 = vsel %vm696_vm3, %v2096_v2, 0.0 }
 0x3db   : > { %v2098_v6 = vpop.eup %2097  ;;  %842 = vadd.xlane.f32.xlu1 %v841_v5 }
 0x3dc   : > { %v844_v7 = vsel %vm700_vm4, %v2098_v6, 0.0 }
 0x3df   : > { %845 = vadd.xlane.f32.xlu1 %v844_v7 }
 0x3f0   : > { %853 = vrot.lane.b32.xlu1 %v2929_v49, %s2484_s16  ;;  %s2391_s16 = scalar_lea.vmem %s2390_s14, 512 }
 0x3f1   : > { %p2393_p8 = scmp.lt.s32.totalorder %s2391_s16, %s2385_s18 }
 0x3f3   : > { %p2394_p4 = por %p2393_p8, %p2392_p2 }
 0x3f4   : > { %999 = vrot.lane.b32.xlu1 %v2898_v11, %s2485_s21 }
 0x3f5   : > { %v712_v8 = vpop.xlane.xlu1 %711  ;;  %p2395_p10 = pnand %p2394_p4, %p2388_p0 }
 0x3f6   : > { %2099 = vrcp.f32 %v712_v8 }
 0x3f9   : > { %v715_v9 = vpop.xlane.xlu1 %714 }
 0x3fa   : > { %2101 = vrcp.f32 %v715_v9 }
 0x400   : > { %v2100_v10 = vpop.eup %2099 }
 0x401   : > { %v718_v13 = vmul.f32 %v2100_v10, %v2092_v51 }
 0x404   : > { %v2102_v12 = vpop.eup %2101 }
 0x405   : > { %v719_v14 = vmul.f32 %v2102_v12, %v2094_v53 }
 0x407   : > { %v720_v15 = vpack.c.bf16 %v719_v14, %v718_v13 }
 0x409   : > { %1857 = vmatmul.mubr.msk.bf16.vlgmr.msra.gmra.mrb[4].mxu0 %vm696_vm3, %v720_v15 }
 0x40a   : > { %1868 = vmatprep.mubr.msk.bf16.mxu0 %vm2483_vm0, %v2482_v0 }
 0x468   : > { %v843_v19 = vpop.xlane.xlu1 %842 }
 0x469   : > { %2103 = vrcp.f32 %v843_v19 }
 0x46c   : > { %v846_v20 = vpop.xlane.xlu1 %845 }
 0x46d   : > { %2105 = vrcp.f32 %v846_v20 }
 0x470   : > { %v854_v21 = vpop.permute.xlu1 %853 }
 0x471   : > { %v859_v22 = vand.u32 %v854_v21, %v2934_v57 }
 0x473   : > { %1867 = vmatpush3.bf16.msra.mxu0 %v859_v22  ;;  %v2104_v23 = vpop.eup %2103 }
 0x474   : > { %1878 = vmatprep.subr.bf16.mxu0 %v2482_v0  ;;  %v849_v26 = vmul.f32 %v2104_v23, %v2096_v2  ;;  %v1000_v42 = vpop.permute.xlu1 %999 }
 0x477   : > { %v2106_v24 = vpop.eup %2105 }
 0x478   : > { %v850_v27 = vmul.f32 %v2106_v24, %v2098_v6 }
 0x47a   : > { %v851_v28 = vpack.c.bf16 %v850_v27, %v849_v26 }
 0x47c   : > { %1869 = vmatmul.mubr.msk.bf16.vlgmr.msra.gmra.mrb[8].mxu0 %vm696_vm3, %v851_v28 }
 0x47d   : > { %1879 = vmatpush3.bf16.msra.mxu0 %v956_v29  ;;  %1880 = vmatprep.mubr.msk.bf16.mxu0 %vm2483_vm0, %v2482_v0 }
 0x47e   : > { %1890 = vmatprep.subr.bf16.mxu0 %v2482_v0 }
 0x4dc   : > { %v765_v30 = vpop.f32.mrb[4].mxu0 }
 0x4dd   : > { %v1858_v31 = vpop.f32.mrb[5].mxu0 }
 0x4de   : > { %v768_v32 = vpop.f32.mrb[6].mxu0 }
 0x4df   : > { %v772_v33 = vpack.c.bf16 %v768_v32, %v765_v30  ;;  %v1859_v34 = vpop.f32.mrb[7].mxu0 }
 0x4e1   : > { %1881 = vmatmul.mubr.msk.bf16.vlgmr.msra.gmra.mrb[12].mxu0 %vm646_vm2, %v772_v33 }
 0x4e2   : > { %1892 = vmatprep.mubr.msk.bf16.mxu0 %vm2483_vm0, %v2482_v0 }
 0x54f   : > { %v895_v35 = vpop.f32.mrb[8].mxu0 }
 0x550   : > { %v1870_v36 = vpop.f32.mrb[9].mxu0 }
 0x551   : > { %v898_v38 = vpop.f32.mrb[10].mxu0 }
 0x552   : > { %v902_v39 = vpack.c.bf16 %v898_v38, %v895_v35  ;;  %v1871_v40 = vpop.f32.mrb[11].mxu0 }
 0x554   : > { %1875 = vmatmul.mubr.msk.bf16.vlgmr.msra.gmra.mrb[16].mxu1 %vm646_vm2, %v902_v39 }
 0x555   : > { %1885 = vmatpush3.bf16.xpose.msra.mxu1 %v1007_v41  ;;  %1886 = vmatprep.mubr.msk.bf16.mxu1 %vm2483_vm0, %v2482_v0 }
 0x556   : > { %1896 = vmatprep.subr.bf16.mxu1 %v2482_v0 }
 0x55c   : > { %1887 = vmatmul.mubr.msk.bf16.vlgmr.msra.gmra.mrb[20].mxu1 %vm646_vm2, %v1000_v42 }
 0x55d   : > { %1898 = vmatprep.mubr.msk.bf16.mxu1 %vm2483_vm0, %v2482_v0 }
 0x5b4   : > { %v992_v43 = vpop.f32.mrb[12].mxu0 }
 0x5b5   : > { %v1882_v44 = vpop.f32.mrb[13].mxu0 }
 0x5b6   : > { %v995_v45 = vpop.f32.mrb[14].mxu0 }
 0x5b7   : > { %v1883_v46 = vpop.f32.mrb[15].mxu0 }
 0x627   : > { %v945_v47 = vpop.f32.mrb[16].mxu1 }
 0x628   : > { %v2968_v48 = vadd.f32 %v992_v43, %v945_v47  ;;  %v1876_v50 = vpop.f32.mrb[17].mxu1 }
 0x629   : > { %v948_v51 = vpop.f32.mrb[18].mxu1 }
 0x62a   : > { %v2970_v52 = vadd.f32 %v995_v45, %v948_v51  ;;  %v1877_v53 = vpop.f32.mrb[19].mxu1 }
 0x62b   : > { %v1303_v53 = vld [vmem:[#allocation10 + $0xc] sm:$0xf] }
 0x62f   : > { %v1043_v54 = vpop.f32.mrb[20].mxu1 }
 0x630   : > { %v1050_v55 = vmul.f32 0.35355338, %v1043_v54  ;;  %v1888_v56 = vpop.f32.mrb[21].mxu1  ;;  %v1308_v54 = vsel %vm724_vm5, %v1303_v53, 0 }
 0x631   : > { %v1046_v58 = vpop.f32.mrb[22].mxu1 }
 0x632   : > { %v1051_v59 = vmul.f32 0.35355338, %v1046_v58  ;;  %v1889_v60 = vpop.f32.mrb[23].mxu1  ;;  %v1052_v61 = vsel %vm696_vm3, %v1050_v55, -inf }
 0x633   : > { %1053 = vmax.xlane.f32.xlu1 %v1052_v61 }
 0x634   : > { %v1055_v62 = vsel %vm700_vm4, %v1051_v59, -inf }
 0x635   : > { %1056 = vmax.xlane.f32.xlu0 %v1055_v62 }
 0x64b   : > { %1075 = vrot.lane.b32.xlu0 %v2929_v49, %s2485_s21 }
 0x6c0   : > { %v1054_v63 = vpop.xlane.xlu1 %1053 }
 0x6c1   : > { %v1058_v1 = vsub.f32 %v1050_v55, %v1054_v63 }
 0x6c2   : > { %v1057_v2 = vpop.xlane.xlu0 %1056 }
 0x6c3   : > { %v1060_v5 = vmul.f32 1.442695, %v1058_v1  ;;  %v1059_v6 = vsub.f32 %v1051_v59, %v1057_v2 }
 0x6c5   : > { %2107 = vpow2.f32 %v1060_v5  ;;  %v1062_v7 = vmul.f32 1.442695, %v1059_v6 }
 0x6c6   : > { %v1076_v8 = vpop.permute.xlu0 %1075 }
 0x6c7   : > { %2109 = vpow2.f32 %v1062_v7  ;;  %v1081_v9 = vand.u32 %v1076_v8, %v2934_v57 }
 0x6c9   : > { %1891 = vmatpush3.bf16.msra.mxu0 %v1081_v9 }
 0x6ca   : > { %1902 = vmatprep.subr.bf16.mxu0 %v2482_v0 }
 0x6cf   : > { %v2108_v10 = vpop.eup %2107 }
 0x6d0   : > { %v1064_v12 = vsel %vm696_vm3, %v2108_v10, 0.0 }
 0x6d1   : > { %v2110_v13 = vpop.eup %2109  ;;  %1065 = vadd.xlane.f32.xlu1 %v1064_v12  ;;  %v2086_v12 = vld [vmem:[#allocation11 + $0x8] sm:$0xff]  }
 0x6d2   : > { %v1067_v14 = vsel %vm700_vm4, %v2110_v13, 0.0 }
 0x6d5   : > { %1068 = vadd.xlane.f32.xlu1 %v1067_v14  ;;  %v2088_v14 = vld [vmem:[#allocation14 + $0x8] sm:$0xff]  }
 0x6e6   : > { %1178 = vrot.lane.b32.xlu1 %v2900_v16, %s2487_s24  ;;  %v1126_v16 = vld [vmem:[#allocation10 + $0x8] sm:$0xf] }
 0x6e7   : > { %v1131_v25 = vsel %vm724_vm5, %v1126_v16, 0 }
 0x6e8   : > { %1897 = vmatpush3.bf16.msra.mxu1 %v1131_v25 }
 0x6e9   : > { %1908 = vmatprep.subr.bf16.mxu1 %v2482_v0 }
 0x6ea   : > { %1176 = vrot.lane.b32.xlu1 %v2898_v11, %s2487_s24 }
 0x75e   : > { %v1066_v15 = vpop.xlane.xlu1 %1065 }
 0x75f   : > { %2111 = vrcp.f32 %v1066_v15  ;;  %v1353_v15 = vlaneseq }
 0x762   : > { %v1069_v17 = vpop.xlane.xlu1 %1068 }
 0x763   : > { %2113 = vrcp.f32 %v1069_v17  ;;  %v3018_v17 = vshrl.u32 %v1353_v15, 7 }
 0x766   : > { %v1179_v22 = vpop.permute.xlu1 %1178 }
 0x767   : > { %v1184_v24 = vsel %vm646_vm2, %v1179_v22, 0 }
 0x769   : > { %v2112_v18 = vpop.eup %2111 }
 0x76a   : > { %v1072_v20 = vmul.f32 %v2112_v18, %v2108_v10  ;;  %v1177_v11 = vpop.permute.xlu1 %1176  ;;  %v2085_v10 = vld [vmem:[#allocation11] sm:$0xff]   ;;  %v1355_v18 = vsub.s32 0, %v3018_v17 }
 0x76d   : > { %v2114_v19 = vpop.eup %2113 }
 0x76e   : > { %v1073_v21 = vmul.f32 %v2114_v19, %v2110_v13  ;;  %v2087_v13 = vld [vmem:[#allocation14] sm:$0xff]  }
 0x76f   : > { %v3021_v19 = vld [vmem:[#allocation16] sm:$0xff] }
 0x770   : > { %v1074_v23 = vpack.c.bf16 %v1073_v21, %v1072_v20  ;;  %v1356_v20 = vrot.slane %v3021_v19, %v1355_v18  ;;  %v1363_v21 = vsub.s32 6, %v3018_v17 }
 0x772   : > { %1893 = vmatmul.mubr.msk.bf16.vlgmr.msra.gmra.mrb[16].mxu0 %vm696_vm3, %v1074_v23  ;;  %v1364_v25 = vrot.slane %v3021_v19, %v1363_v21 }
 0x773   : > { %1903 = vmatpush3.bf16.xpose.msra.mxu0 %v1184_v24  ;;  %1904 = vmatprep.mubr.msk.bf16.mxu0 %vm2483_vm0, %v2482_v0 }
 0x774   : > { %1914 = vmatprep.subr.bf16.mxu0 %v2482_v0 }
 0x77a   : > { %1905 = vmatmul.mubr.msk.bf16.vlgmr.msra.gmra.mrb[20].mxu0 %vm646_vm2, %v1177_v11 }
 0x77b   : > { %1916 = vmatprep.mubr.msk.bf16.mxu0 %vm2483_vm0, %v2482_v0  ;;  %1915 = vmatpush3.bf16.msra.mxu0 %v1308_v54 }
 0x77c   : > { %1928 = vmatprep.subr.bf16.mxu0 %v2482_v0 }
 0x845   : > { %v1117_v26 = vpop.f32.mrb[16].mxu0 }
 0x846   : > { %v1894_v27 = vpop.f32.mrb[17].mxu0 }
 0x847   : > { %v1120_v28 = vpop.f32.mrb[18].mxu0 }
 0x848   : > { %v1124_v29 = vpack.c.bf16 %v1120_v28, %v1117_v26  ;;  %v1895_v30 = vpop.f32.mrb[19].mxu0 }
 0x84a   : > { %1899 = vmatmul.mubr.msk.bf16.vlgmr.msra.gmra.mrb[24].mxu1 %vm646_vm2, %v1124_v29 }
 0x84b   : > { %1910 = vmatprep.mubr.msk.bf16.mxu1 %vm2483_vm0, %v2482_v0 }
 0x84d   : > { %v1220_v31 = vpop.f32.mrb[20].mxu0 }
 0x84e   : > { %v1227_v32 = vmul.f32 0.35355338, %v1220_v31  ;;  %v1906_v33 = vpop.f32.mrb[21].mxu0 }
 0x84f   : > { %v1223_v34 = vpop.f32.mrb[22].mxu0  ;;  %v1371_v33 = vsub.s32 1, %v3018_v17 }
 0x850   : > { %v1228_v35 = vmul.f32 0.35355338, %v1223_v34  ;;  %v1907_v36 = vpop.f32.mrb[23].mxu0  ;;  %v1229_v37 = vsel %vm696_vm3, %v1227_v32, -inf }
 0x851   : > { %1230 = vmax.xlane.f32.xlu0 %v1229_v37  ;;  %v1372_v34 = vrot.slane %v3021_v19, %v1371_v33 }
 0x852   : > { %v1232_v38 = vsel %vm700_vm4, %v1228_v35, -inf }
 0x853   : > { %1233 = vmax.xlane.f32.xlu1 %v1232_v38 }
 0x864   : > { %1252 = vrot.lane.b32.xlu1 %v2929_v49, %s2487_s24 }
 0x8de   : > { %v1231_v39 = vpop.xlane.xlu0 %1230 }
 0x8df   : > { %v1235_v40 = vsub.f32 %v1227_v32, %v1231_v39 }
 0x8e0   : > { %v1234_v41 = vpop.xlane.xlu1 %1233 }
 0x8e1   : > { %v1237_v42 = vmul.f32 1.442695, %v1235_v40  ;;  %v1236_v43 = vsub.f32 %v1228_v35, %v1234_v41  ;;  %v1377_v35 = vsub.s32 2, %v3018_v17 }
 0x8e3   : > { %2115 = vpow2.f32 %v1237_v42  ;;  %v1239_v44 = vmul.f32 1.442695, %v1236_v43  ;;  %v1378_v38 = vrot.slane %v3021_v19, %v1377_v35  ;;  %v2090_v43 = vld [vmem:[#allocation14 + $0x18] sm:$0xff]  }
 0x8e4   : > { %v1253_v45 = vpop.permute.xlu1 %1252 }
 0x8e5   : > { %2117 = vpow2.f32 %v1239_v44  ;;  %v1258_v46 = vand.u32 %v1253_v45, %v2934_v57  ;;  %v1767_v44 = vld [vmem:[#allocation13] ss:$0 sm:$0xff] }
 0x8e7   : > { %1909 = vmatpush3.bf16.msra.mxu1 %v1258_v46 }
 0x8e8   : > { %1920 = vmatprep.subr.bf16.mxu1 %v2482_v0 }
 0x8ed   : > { %v2116_v47 = vpop.eup %2115 }
 0x8ee   : > { %v1241_v50 = vsel %vm696_vm3, %v2116_v47, 0.0 }
 0x8ef   : > { %v2118_v51 = vpop.eup %2117  ;;  %1242 = vadd.xlane.f32.xlu0 %v1241_v50 }
 0x8f0   : > { %v1244_v49 = vsel %vm700_vm4, %v2118_v51, 0.0 }
 0x8f3   : > { %1245 = vadd.xlane.f32.xlu0 %v1244_v49 }
 0x91d   : > { %v1167_v55 = vpop.f32.mrb[24].mxu1 }
 0x91e   : > { %v1174_v57 = vadd.f32 %v1167_v55, %v2968_v48  ;;  %v1900_v56 = vpop.f32.mrb[25].mxu1 }
 0x91f   : > { %v1170_v58 = vpop.f32.mrb[26].mxu1 }
 0x920   : > { %v1175_v59 = vadd.f32 %v1170_v58, %v2970_v52  ;;  %v1901_v60 = vpop.f32.mrb[27].mxu1 }
 0x97c   : > { %v1243_v61 = vpop.xlane.xlu0 %1242 }
 0x97d   : > { %2119 = vrcp.f32 %v1243_v61 }
 0x980   : > { %v1246_v62 = vpop.xlane.xlu0 %1245 }
 0x981   : > { %2121 = vrcp.f32 %v1246_v62 }
 0x987   : > { %v2120_v63 = vpop.eup %2119 }
 0x988   : > { %v1249_v2 = vmul.f32 %v2120_v63, %v2116_v47 }
 0x98b   : > { %v2122_v1 = vpop.eup %2121 }
 0x98c   : > { %v1250_v5 = vmul.f32 %v2122_v1, %v2118_v51 }
 0x98e   : > { %v1251_v6 = vpack.c.bf16 %v1250_v5, %v1249_v2 }
 0x990   : > { %1911 = vmatmul.mubr.msk.bf16.vlgmr.msra.gmra.mrb[28].mxu1 %vm696_vm3, %v1251_v6 }
 0x991   : > { %1924 = vmatprep.mubr.msk.bf16.mxu1 %vm2483_vm0, %v2482_v0  ;;  %1921 = vmatpush3.bf16.msra.mxu1 %v2085_v10 }
 0x992   : > { %1922 = vmatprep.subr.bf16.mxu1 %v2482_v0 }
 0x995   : > { %1923 = vmatpush3.bf16.msra.mxu1 %v2086_v12 }
 0xa63   : > { %v1294_v48 = vpop.f32.mrb[28].mxu1 }
 0xa64   : > { %v1912_v7 = vpop.f32.mrb[29].mxu1 }
 0xa65   : > { %v1297_v8 = vpop.f32.mrb[30].mxu1  ;;  %v1545_v7 = vsub.s32 3, %v3018_v17 }
 0xa66   : > { %v1301_v9 = vpack.c.bf16 %v1297_v8, %v1294_v48  ;;  %v1913_v52 = vpop.f32.mrb[31].mxu1  ;;  %v1551_v8 = vsub.s32 4, %v3018_v17 }
 0xa68   : > { %1917 = vmatmul.mubr.msk.bf16.vlgmr.msra.gmra.mrb[24].mxu0 %vm646_vm2, %v1301_v9  ;;  %v1546_v9 = vrot.slane %v3021_v19, %v1545_v7  ;;  %v1552_v52 = vrot.slane %v3021_v19, %v1551_v8 }
 0xa69   : > { %1936 = vmatprep.mubr.msk.bf16.mxu0 %vm2483_vm0, %v2482_v0  ;;  %1929 = vmatpush3.bf16.msra.mxu0 %v2087_v13 }
 0xa6a   : > { %1930 = vmatprep.subr.bf16.mxu0 %v2482_v0 }
 0xa6d   : > { %1931 = vmatpush3.bf16.msra.mxu0 %v2088_v14 }
 0xa6e   : > { %1932 = vmatprep.subr.bf16.mxu0 %v2482_v0 }
 0xb3b   : > { %v1344_v22 = vpop.f32.mrb[24].mxu0 }
 0xb3c   : > { %v1351_v23 = vadd.f32 %v1344_v22, %v1174_v57  ;;  %v1918_v24 = vpop.f32.mrb[25].mxu0  ;;  %v1462_v57 = vsub.s32 5, %v3018_v17 }
 0xb3d   : > { %v1347_v11 = vpop.f32.mrb[26].mxu0 }
 0xb3e   : > { %v1357_v16 = vadd.f32 %v1356_v20, %v1351_v23  ;;  %v1352_v26 = vadd.f32 %v1347_v11, %v1175_v59  ;;  %v1919_v27 = vpop.f32.mrb[27].mxu0  ;;  %v1463_v56 = vrot.slane %v3021_v19, %v1462_v57 }
 0xb40   : > { %v1359_v28 = vadd.f32 %v1357_v16, %v2882_v3  ;;  %v1358_v29 = vadd.f32 %v1356_v20, %v1352_v26 }
 0xb42   : > { %v1365_v30 = vmul.f32 %v1364_v25, %v1359_v28  ;;  %v1360_v31 = vadd.f32 %v1358_v29, %v2884_v4  ;;  %v2089_v4 = vld [vmem:[#allocation14 + $0x10] sm:$0xff]  }
 0xb43   : > { %1933 = vmatpush3.bf16.msra.mxu0 %v2089_v4 }
 0xb44   : > { %2123 = vtanh.f32 %v1365_v30  ;;  %v1366_v32 = vmul.f32 %v1364_v25, %v1360_v31  ;;  %1934 = vmatprep.subr.bf16.mxu0 %v2482_v0  ;;  %v1537_v0 = vsub.s32 7, %v3018_v17 }
 0xb46   : > { %2125 = vtanh.f32 %v1366_v32  ;;  %v1538_v60 = vrot.slane %v3021_v19, %v1537_v0 }
 0xb47   : > { %1935 = vmatpush3.bf16.msra.mxu0 %v2090_v43 }
 0xb4e   : > { %v2124_v36 = vpop.eup %2123 }
 0xb4f   : > { %v1373_v37 = vmul.f32 %v2124_v36, %v1372_v34 }
 0xb50   : > { %v2126_v39 = vpop.eup %2125 }
 0xb51   : > { %v1374_v40 = vmul.f32 %v2126_v39, %v1372_v34  ;;  %v1379_v3 = vadd.f32 %v1378_v38, %v1373_v37 }
 0xb53   : > { %v1380_v41 = vadd.f32 %v1378_v38, %v1374_v40 }
 0xb55   : > { %v1381_v42 = vpack.c.bf16 %v1380_v41, %v1379_v3 }
 0xb57   : > { %1925 = vmatmul.mubr.msk.bf16.vlgmr.msra.gmra.mrb[32].mxu1 %vm484_vm1, %v1381_v42 }
 0xc2a   : > { %v1442_v45 = vpop.f32.mrb[32].mxu1 }
 0xc2b   : > { %v1443_v46 = vadd.f32 %v1767_v44, %v1442_v45  ;;  %v1926_v47 = vpop.f32.mrb[33].mxu1 }
 0xc2c   : > { %v1445_v50 = vpop.f32.mrb[34].mxu1 }
 0xc2d   : > { %v1446_v51 = vadd.f32 %v1767_v44, %v1445_v50  ;;  %v1927_v49 = vpop.f32.mrb[35].mxu1  ;;  %v1449_v53 = vmax.f32 %v1443_v46, 0.0 }
 0xc2f   : > { %v1450_v54 = vmax.f32 %v1446_v51, 0.0 }
 0xc31   : > { %v1451_v55 = vpack.c.bf16 %v1450_v54, %v1449_v53 }
 0xc33   : > { %1937 = vmatmul.mubr.msk.bf16.vlgmr.msra.gmra.mrb[28].mxu0 %vm1488_vm7, %v1451_v55 }
 0xd06   : > { %v1526_v58 = vpop.f32.mrb[28].mxu0 }
 0xd07   : > { %v1527_v59 = vadd.f32 %v1526_v58, %v1463_v56  ;;  %v1938_v61 = vpop.f32.mrb[29].mxu0 }
 0xd08   : > { %v1529_v62 = vpop.f32.mrb[30].mxu0 }
 0xd09   : > { %v1533_v63 = vadd.f32 %v1527_v59, %v1379_v3  ;;  %v1530_v1 = vadd.f32 %v1529_v62, %v1463_v56  ;;  %v1939_v2 = vpop.f32.mrb[31].mxu0 }
 0xd0b   : > { %v1539_v5 = vmul.f32 %v1538_v60, %v1533_v63  ;;  %v1534_v6 = vadd.f32 %v1530_v1, %v1380_v41 }
 0xd0d   : > { %2127 = vtanh.f32 %v1539_v5  ;;  %v1540_v48 = vmul.f32 %v1538_v60, %v1534_v6 }
 0xd0f   : > { %2129 = vtanh.f32 %v1540_v48 }
 0xd17   : > { %v2128_v10 = vpop.eup %2127 }
 0xd18   : > { %v1547_v12 = vmul.f32 %v2128_v10, %v1546_v9 }
 0xd19   : > { %v2130_v13 = vpop.eup %2129 }
 0xd1a   : > { %v1553_v14 = vadd.f32 %v1552_v52, %v1547_v12  ;;  %v1548_v15 = vmul.f32 %v2130_v13, %v1546_v9 }
 0xd1c   : > { %v1554_v17 = vadd.f32 %v1552_v52, %v1548_v15  ;;  %1555 = vst.msk [vmem:[%s462_s27] sm:$0xff] %vm484_vm1, %v1553_v14 }
 0xd1e   : > { %1557 = vst.msk [vmem:[%s462_s27 + $0x8] sm:$0x1] %vm1556_vm8, %v1554_v17 }
 0xd1f   : > { %2398 = shalt.err (!%p2395_p10)
}
 0xd20   : > { %s2399_s21 = scalar_lea.hbm %s3048_s25, 256  ;;  %s2403_s27 = scalar_lea.hbm %s3130_s20, 512 }
 0xd21   : > { %p2400_p11 = scmp.ne.s32.totalorder %s3048_s25, %s2399_s21  ;;  %p2404_p7 = scmp.lt.u32.totalorder %s3048_s25, %s3130_s20 }
 0xd22   : > { %p2405_p6 = scmp.lt.u32.totalorder %s2403_s27, %s2399_s21  ;;  %p2407_p12 = scmp.lt.u32.totalorder %s2399_s21, %s3048_s25 }
 0xd23   : > { %p2401_p3 = pnand %p2400_p11, %p3131_p1 }
 0xd24   : > { %p2406_p9 = por %p2405_p6, %p2404_p7 }
 0xd25   : > { %p2402_p5 = pneg %p2401_p3 }
 0xd26   : > { %p2408_p13 = por %p2407_p12, %p2406_p9 }
 0xd28   : > { %p2409_p0 = pnand %p2408_p13, %p2402_p5 }
 0xd2a   : > { %2412 = shalt.err (!%p2409_p0)
}
 0xd2b   : > { %s2489_s18 = smov 128   ;;  %s2490_s1 = smov 8  }
 0xd2c   : > { %1974 = dma.vmem_to_hbm [thread:$0]  (%p3131_p1), %s3050_s17, 256, %s3048_s25, %s1559_s15, %s2489_s18, %s2489_s18, %s2490_s1  }
 0xd2d PF: > { %s1587_s14 = sand.u32 1, %s2455_s30   ;;  %p3132_p2 = scmp.ne.s32.totalorder %s3119_s26, 0 }
 0xd2e   : > { %p3133_p8 = scmp.ge.s32.totalorder %s2467_s12, 2  ;;  %s1588_s16 = scalar_lea.sflag [#allocation4], %s1587_s14 }
 0xd30   : > { %p2006_p4 = pnand %p3133_p8, %p3132_p2 }
 0xd32   : > { %2450 = dma.done.wait (!%p2006_p4), %s1588_s16, 256  }
 0xd33   : > { %2452 = vsyncadd (!%p2006_p4), %s1588_s16, 4294967040  ;;  %p26_p10 = scmp.ge.s32.totalorder %s2771_s19, 4   ;;  %s3134_s30 = smov %s2459_s10 }
 0xd34   : > { %s3135_s10 = smov %s2463_s11  ;;  %s3136_s11 = smov %s2782_s9 }
 0xd35   : > { %s3137_s12 = smov %s2771_s19  ;;  %28 = sbr.rel (!%p26_p10) target bundleno = 12 (0xc), region = 136 }
 0xd3c   :  { %1593 = vsyncpa [#allocation3], 1 }
 0xd3d   :  { %1595 = vsyncpa [#allocation3 + $0x1], 1 }
 0xd3e   :  { %1596 = vsyncpa [#allocation6], 1 }
 0xd3f   :  { %1597 = vsyncpa [#allocation9], 1 }
 0xd40   :  { %1598 = vsyncpa [#allocation12], 1 }
 0xd41   :  { %1599 = vsyncpa [#allocation15], 1 }
 0xd42   :  { %1600 = vsyncpa [#allocation4], 1 }
 0xd43   :  { %1602 = vsyncpa [#allocation4 + $0x1], 1 }

</bundles_post_ra>
